<compile_context>
chip_gen: v7x
topology: tpu7x:2x2x1
jax: 0.10.0
libtpu: 0.0.40
codegen_flags: <defaults>
</compile_context>

<pallas_src>
import jax
import jax.numpy as jnp
from jax.experimental import pallas as pl
from jax.experimental.pallas import tpu as pltpu


def _round_up(n, m):
    return ((n + m - 1) // m) * m


def _mlp_kernel(x_ref, w1_ref, b1_ref, w2_ref, b2_ref, w3_ref, b3_ref, o_ref):
    # x arrives as f32; cast to bf16 on the VPU right before the MXU (hides
    # under the matmul) instead of paying a separate HBM convert pass.
    x = x_ref[...].astype(jnp.bfloat16)

    # layer1 + bias + ReLU  (dropout = identity in eval mode)
    h1 = jnp.dot(x, w1_ref[...], preferred_element_type=jnp.float32)
    h1 = jnp.maximum(h1 + b1_ref[...], 0.0)

    # layer2 + bias + ReLU  (dropout = identity in eval mode)
    h2 = jnp.dot(h1.astype(jnp.bfloat16), w2_ref[...],
                 preferred_element_type=jnp.float32)
    h2 = jnp.maximum(h2 + b2_ref[...], 0.0)

    # layer3 (lane-padded to 128 outputs, kept in f32; no activation)
    out = jnp.dot(h2, w3_ref[...], preferred_element_type=jnp.float32)
    o_ref[...] = (out + b3_ref[...]).astype(o_ref.dtype)


def prepare_params(params):
    """One-time prep: bf16 weights for layers 1/2, lane-padded f32 layer 3.

    Do this once at init (or under jit with the result cached) so the
    per-call path is just a single pallas_call.
    """
    w1, b1 = params["w1"], params["b1"]   # (in_dim, hid),  (1, hid)
    w2, b2 = params["w2"], params["b2"]   # (hid, hid//2),  (1, hid//2)
    w3, b3 = params["w3"], params["b3"]   # (hid//2, 6),    (1, 6)
    out_dim = w3.shape[1]
    out_pad = max(128, _round_up(out_dim, 128))

    w3p = jnp.zeros((w3.shape[0], out_pad), jnp.float32).at[:, :out_dim].set(w3)
    b3p = jnp.zeros((1, out_pad), jnp.float32).at[:, :out_dim].set(b3)

    return {
        "w1": w1.astype(jnp.bfloat16), "b1": b1.astype(jnp.float32),
        "w2": w2.astype(jnp.bfloat16), "b2": b2.astype(jnp.float32),
        "w3p": w3p, "b3p": b3p,
        "out_dim": out_dim, "out_pad": out_pad,
    }


def domain_discriminator(x, prep, *, tile_b=None):
    """x: (B, input_dim) float32. prep: output of prepare_params()."""
    B, in_dim = x.shape
    w1, b1 = prep["w1"], prep["b1"]
    w2, b2 = prep["w2"], prep["b2"]
    w3p, b3p = prep["w3p"], prep["b3p"]
    out_dim, out_pad = prep["out_dim"], prep["out_pad"]
    hid, hid2 = w1.shape[1], w2.shape[1]

    # --- batch tiling ---------------------------------------------------
    # Single grid step for B <= 1024 (single-TC chips gain nothing from a
    # split; v7x only benefits once each shard fills the 256-row MXU).
    # For larger B use MXU-aligned 1024-row tiles; the "parallel" grid axis
    # lets v7x's two TensorCores share them.
    if tile_b is None:
        tile_b = _round_up(B, 8) if B <= 1024 else 1024
    tile_b = max(8, _round_up(min(tile_b, _round_up(B, 8)), 8))
    grid = (pl.cdiv(B, tile_b),)

    # --- VMEM budget (sized against v7x's 64 MiB physical VMEM) ----------
    wbytes = (in_dim * hid + hid * hid2) * 2 + hid2 * out_pad * 4
    bbytes = (hid + hid2) * 4 + out_pad * 4
    vmem_need = (
        2 * tile_b * in_dim * 4            # double-buffered x tile (f32)
        + 2 * tile_b * out_pad * 4         # double-buffered out tile (f32)
        + 2 * (wbytes + bbytes)            # resident weights
        + tile_b * (hid + hid2) * (4 + 2)  # f32 + bf16 intermediates
    )
    vmem_limit = int(min(max(2 * vmem_need, 32 * 1024 * 1024),
                         56 * 1024 * 1024))

    cost = pl.CostEstimate(
        flops=2 * B * (in_dim * hid + hid * hid2 + hid2 * out_pad),
        transcendentals=0,
        bytes_accessed=B * in_dim * 4 + wbytes + bbytes + B * out_pad * 4,
    )

    out_p = pl.pallas_call(
        _mlp_kernel,
        out_shape=jax.ShapeDtypeStruct((B, out_pad), x.dtype),
        grid_spec=pltpu.PrefetchScalarGridSpec(
            num_scalar_prefetch=0,
            grid=grid,
            in_specs=[
                pl.BlockSpec((tile_b, in_dim), lambda i: (i, 0)),   # x tile (f32)
                pl.BlockSpec((in_dim, hid), lambda i: (0, 0)),      # w1 (bf16)
                pl.BlockSpec((1, hid), lambda i: (0, 0)),           # b1 (f32)
                pl.BlockSpec((hid, hid2), lambda i: (0, 0)),        # w2 (bf16)
                pl.BlockSpec((1, hid2), lambda i: (0, 0)),          # b2 (f32)
                pl.BlockSpec((hid2, out_pad), lambda i: (0, 0)),    # w3 padded (f32)
                pl.BlockSpec((1, out_pad), lambda i: (0, 0)),       # b3 padded (f32)
            ],
            out_specs=pl.BlockSpec((tile_b, out_pad), lambda i: (i, 0)),
        ),
        compiler_params=pltpu.CompilerParams(
            dimension_semantics=("parallel",),
            vmem_limit_bytes=vmem_limit,
        ),
        cost_estimate=cost,
    )(x, w1, b1, w2, b2, w3p, b3p)

    return out_p[:, :out_dim]


def init_params(key, input_dim, hidden_dim):
    """Deterministic init mimicking nn.Linear's uniform(-1/sqrt(fan_in), ...)."""
    dims = [(input_dim, hidden_dim),
            (hidden_dim, hidden_dim // 2),
            (hidden_dim // 2, 6)]
    params = {}
    for idx, (fan_in, fan_out) in enumerate(dims, start=1):
        key, kw, kb = jax.random.split(key, 3)
        bound = 1.0 / (fan_in ** 0.5)
        # store W already transposed to (in, out) for the kernel
        params[f"w{idx}"] = jax.random.uniform(
            kw, (fan_in, fan_out), jnp.float32, -bound, bound)
        params[f"b{idx}"] = jax.random.uniform(
            kb, (1, fan_out), jnp.float32, -bound, bound)
    return params


def reference_forward(x, params):
    """Pure-JAX reference using the same numerics recipe as the kernel
    (bf16 MXU inputs for layers 1/2, f32 layer 3, f32 accumulate)."""
    bf = jnp.bfloat16
    h1 = jnp.maximum(
        jnp.dot(x.astype(bf), params["w1"].astype(bf),
                preferred_element_type=jnp.float32) + params["b1"], 0.0)
    h2 = jnp.maximum(
        jnp.dot(h1.astype(bf), params["w2"].astype(bf),
                preferred_element_type=jnp.float32) + params["b2"], 0.0)
    return jnp.dot(h2, params["w3"],
                   preferred_element_type=jnp.float32) + params["b3"]


if __name__ == "__main__":
    # Module defaults (input_dim=1024, hidden_dim=512) at a small batch.
    B, INPUT_DIM, HIDDEN_DIM = 32, 1024, 512

    key = jax.random.PRNGKey(0)
    kx, kp = jax.random.split(key)
    x = jax.random.normal(kx, (B, INPUT_DIM), dtype=jnp.float32)
    params = init_params(kp, INPUT_DIM, HIDDEN_DIM)

    prep = prepare_params(params)          # one-time weight prep (bf16 + pad)
    out = domain_discriminator(x, prep)
    out = jax.block_until_ready(out)

    ref = reference_forward(x, params)
    assert out.shape == (B, 6), out.shape
    assert jnp.allclose(out, ref, atol=2e-2, rtol=2e-2), "mismatch vs reference"

    print("KERNEL_OK")
</pallas_src>

<mosaic_0001>
module attributes {stable_mosaic.version = 11 : i64} {
  func.func @_mlp_kernel(%arg0: i32, %arg1: memref<32x1024xf32, #tpu.memory_space<vmem>>, %arg2: memref<1024x512xbf16, #tpu.memory_space<vmem>>, %arg3: memref<1x512xf32, #tpu.memory_space<vmem>>, %arg4: memref<512x256xbf16, #tpu.memory_space<vmem>>, %arg5: memref<1x256xf32, #tpu.memory_space<vmem>>, %arg6: memref<256x128xf32, #tpu.memory_space<vmem>>, %arg7: memref<1x128xf32, #tpu.memory_space<vmem>>, %arg8: memref<32x128xf32, #tpu.memory_space<vmem>>) attributes {dimension_semantics = [#tpu.dimension_semantics<parallel>], iteration_bounds = array<i64: 1>, scalar_prefetch = 0 : i64, scratch_operands = 0 : i64, tpu.core_type = #tpu.core_type<tc>, window_params = [{transform_indices = @transform_0, window_bounds = array<i64: 32, 1024>}, {pipeline_mode = #tpu.pipeline_mode<synchronous>, transform_indices = @transform_1, window_bounds = array<i64: 1024, 512>}, {pipeline_mode = #tpu.pipeline_mode<synchronous>, transform_indices = @transform_2, window_bounds = array<i64: 1, 512>}, {pipeline_mode = #tpu.pipeline_mode<synchronous>, transform_indices = @transform_3, window_bounds = array<i64: 512, 256>}, {pipeline_mode = #tpu.pipeline_mode<synchronous>, transform_indices = @transform_4, window_bounds = array<i64: 1, 256>}, {pipeline_mode = #tpu.pipeline_mode<synchronous>, transform_indices = @transform_5, window_bounds = array<i64: 256, 128>}, {pipeline_mode = #tpu.pipeline_mode<synchronous>, transform_indices = @transform_6, window_bounds = array<i64: 1, 128>}, {transform_indices = @transform_7, window_bounds = array<i64: 32, 128>}]} {
    %c0 = arith.constant 0 : index
    %c0_0 = arith.constant 0 : index
    %0 = vector.load %arg1[%c0, %c0_0] : memref<32x1024xf32, #tpu.memory_space<vmem>>, vector<32x1024xf32>
    %1 = arith.truncf %0 : vector<32x1024xf32> to vector<32x1024xbf16>
    %c0_1 = arith.constant 0 : index
    %c0_2 = arith.constant 0 : index
    %2 = vector.load %arg2[%c0_1, %c0_2] : memref<1024x512xbf16, #tpu.memory_space<vmem>>, vector<1024x512xbf16>
    %cst = arith.constant dense<0.000000e+00> : vector<32x512xf32>
    %3 = tpu.matmul %1, %2, %cst {dimension_numbers = #tpu.dot_dimension_numbers<[1], [0], [0], [1], [0, 0, 1, 1], [], []>} : vector<32x1024xbf16>, vector<1024x512xbf16>, vector<32x512xf32> -> vector<32x512xf32>
    %c0_3 = arith.constant 0 : index
    %c0_4 = arith.constant 0 : index
    %4 = vector.load %arg3[%c0_3, %c0_4] : memref<1x512xf32, #tpu.memory_space<vmem>>, vector<1x512xf32>
    %5 = vector.broadcast %4 : vector<1x512xf32> to vector<32x512xf32>
    %6 = arith.addf %3, %5 : vector<32x512xf32>
    %cst_5 = arith.constant 0.000000e+00 : f32
    %7 = vector.broadcast %cst_5 : f32 to vector<32x512xf32>
    %8 = arith.maximumf %6, %7 : vector<32x512xf32>
    %9 = arith.truncf %8 : vector<32x512xf32> to vector<32x512xbf16>
    %c0_6 = arith.constant 0 : index
    %c0_7 = arith.constant 0 : index
    %10 = vector.load %arg4[%c0_6, %c0_7] : memref<512x256xbf16, #tpu.memory_space<vmem>>, vector<512x256xbf16>
    %cst_8 = arith.constant dense<0.000000e+00> : vector<32x256xf32>
    %11 = tpu.matmul %9, %10, %cst_8 {dimension_numbers = #tpu.dot_dimension_numbers<[1], [0], [0], [1], [0, 0, 1, 1], [], []>} : vector<32x512xbf16>, vector<512x256xbf16>, vector<32x256xf32> -> vector<32x256xf32>
    %c0_9 = arith.constant 0 : index
    %c0_10 = arith.constant 0 : index
    %12 = vector.load %arg5[%c0_9, %c0_10] : memref<1x256xf32, #tpu.memory_space<vmem>>, vector<1x256xf32>
    %13 = vector.broadcast %12 : vector<1x256xf32> to vector<32x256xf32>
    %14 = arith.addf %11, %13 : vector<32x256xf32>
    %cst_11 = arith.constant 0.000000e+00 : f32
    %15 = vector.broadcast %cst_11 : f32 to vector<32x256xf32>
    %16 = arith.maximumf %14, %15 : vector<32x256xf32>
    %c0_12 = arith.constant 0 : index
    %c0_13 = arith.constant 0 : index
    %17 = vector.load %arg6[%c0_12, %c0_13] : memref<256x128xf32, #tpu.memory_space<vmem>>, vector<256x128xf32>
    %cst_14 = arith.constant dense<0.000000e+00> : vector<32x128xf32>
    %18 = tpu.matmul %16, %17, %cst_14 {dimension_numbers = #tpu.dot_dimension_numbers<[1], [0], [0], [1], [0, 0, 1, 1], [], []>} : vector<32x256xf32>, vector<256x128xf32>, vector<32x128xf32> -> vector<32x128xf32>
    %c0_15 = arith.constant 0 : index
    %c0_16 = arith.constant 0 : index
    %19 = vector.load %arg7[%c0_15, %c0_16] : memref<1x128xf32, #tpu.memory_space<vmem>>, vector<1x128xf32>
    %20 = vector.broadcast %19 : vector<1x128xf32> to vector<32x128xf32>
    %21 = arith.addf %18, %20 : vector<32x128xf32>
    %c0_17 = arith.constant 0 : index
    %c0_18 = arith.constant 0 : index
    %22 = vector.load %arg8[%c0_17, %c0_18] : memref<32x128xf32, #tpu.memory_space<vmem>>, vector<32x128xf32>
    tpu.vector_store %arg8[%c0_17, %c0_18], %21 {strides = array<i32>} : memref<32x128xf32, #tpu.memory_space<vmem>>, vector<32x128xf32>,
    return
  }
  func.func @transform_0(%arg0: i32) -> (i32, i32) {
    %c0_i32 = arith.constant 0 : i32
    %c0_i32_0 = arith.constant 0 : i32
    return %arg0, %c0_i32 : i32, i32
  }
  func.func @transform_1(%arg0: i32) -> (i32, i32) {
    %c0_i32 = arith.constant 0 : i32
    %c0_i32_0 = arith.constant 0 : i32
    %c0_i32_1 = arith.constant 0 : i32
    return %c0_i32, %c0_i32_0 : i32, i32
  }
  func.func @transform_2(%arg0: i32) -> (i32, i32) {
    %c0_i32 = arith.constant 0 : i32
    %c0_i32_0 = arith.constant 0 : i32
    %c0_i32_1 = arith.constant 0 : i32
    return %c0_i32, %c0_i32_0 : i32, i32
  }
  func.func @transform_3(%arg0: i32) -> (i32, i32) {
    %c0_i32 = arith.constant 0 : i32
    %c0_i32_0 = arith.constant 0 : i32
    %c0_i32_1 = arith.constant 0 : i32
    return %c0_i32, %c0_i32_0 : i32, i32
  }
  func.func @transform_4(%arg0: i32) -> (i32, i32) {
    %c0_i32 = arith.constant 0 : i32
    %c0_i32_0 = arith.constant 0 : i32
    %c0_i32_1 = arith.constant 0 : i32
    return %c0_i32, %c0_i32_0 : i32, i32
  }
  func.func @transform_5(%arg0: i32) -> (i32, i32) {
    %c0_i32 = arith.constant 0 : i32
    %c0_i32_0 = arith.constant 0 : i32
    %c0_i32_1 = arith.constant 0 : i32
    return %c0_i32, %c0_i32_0 : i32, i32
  }
  func.func @transform_6(%arg0: i32) -> (i32, i32) {
    %c0_i32 = arith.constant 0 : i32
    %c0_i32_0 = arith.constant 0 : i32
    %c0_i32_1 = arith.constant 0 : i32
    return %c0_i32, %c0_i32_0 : i32, i32
  }
  func.func @transform_7(%arg0: i32) -> (i32, i32) {
    %c0_i32 = arith.constant 0 : i32
    %c0_i32_0 = arith.constant 0 : i32
    return %arg0, %c0_i32 : i32, i32
  }
}

</mosaic_0001>

<bundles_post_ra>
// kernel: tpu_custom_call.1
= control target key start
LH: loop header
LB: loop body
LE: loop exit
PB: predicated region body
PF: predicated region fallthrough
CT: control target
= control target key end

     0   :  { %12 = vsyncpa [#allocation3], 0  ;;  %s4172_s0 = inlined_call_operand.hbm [shape: f32[32,1024], index: 0, kind: input, shape index: {}]   ;;  %s4173_s1 = inlined_call_operand.hbm [shape: bf16[1024,512], index: 1, kind: input, shape index: {}]   ;;  %s4174_s2 = inlined_call_operand.vmem [shape: f32[1,512], index: 2, kind: input, shape index: {}]   ;;  %s4175_s3 = inlined_call_operand.hbm [shape: bf16[512,256], index: 3, kind: input, shape index: {}]   ;;  %s4176_s4 = inlined_call_operand.vmem [shape: f32[1,256], index: 4, kind: input, shape index: {}]   ;;  %s4177_s5 = inlined_call_operand.hbm [shape: f32[256,128], index: 5, kind: input, shape index: {}]   ;;  %s4178_s6 = inlined_call_operand.vmem [shape: f32[1,128], index: 6, kind: input, shape index: {}]   ;;  %s4179_s7 = inlined_call_operand.hbm [shape: f32[32,128], index: 7, kind: output, shape index: {}]  }
   0x1   :  { %13 = vsyncpa [#allocation6], 0 }
   0x2   :  { %14 = vsyncpa [#allocation9], 0 }
   0x3   :  { %15 = vsyncpa [#allocation4], 0  ;;  %s3895_s24 = smov [#allocation5]   ;;  %s3777_s28 = scalar_lea.hbm %s4173_s1, 32768 }
   0x4   :  { %s33_s25 = sshll.u32 %s3895_s24, 4  ;;  %p3778_p0 = scmp.ne.s32.totalorder %s4173_s1, %s3777_s28  ;;  %s34_s25 = int_to_ptr.vmem [resolvable:$true] %s33_s25 }
   0x5   :  { %p3781_p1 = scmp.lt.u32.totalorder %s3777_s28, %s4173_s1 }
   0x7   :  { %p3783_p2 = pnand %p3781_p1, %p3778_p0 }
   0x9   :  { %3786 = shalt.err (!%p3783_p2)
}
   0xa   :  { %s3787_s10 = scalar_lea.vmem %s34_s25, 32768  ;;  %p3792_p4 = scmp.lt.s32.totalorder %s34_s25, %s34_s25 }
   0xb   :  { %p3788_p3 = scmp.ne.s32.totalorder %s34_s25, %s3787_s10  ;;  %p3793_p5 = scmp.lt.s32.totalorder %s3787_s10, %s3787_s10 }
   0xd   :  { %p3794_p6 = por %p3793_p5, %p3792_p4 }
   0xf   :  { %p3795_p7 = pnand %p3794_p6, %p3788_p3 }
  0x11   :  { %3798 = shalt.err (!%p3795_p7)
}
  0x12   :  { %s3896_s11 = smov 256   ;;  %s3897_s12 = smov 16  }
  0x13   :  { %39 = dma.hbm_to_vmem [thread:$0]  %s4173_s1, 32768, %s34_s25, [#allocation6], %s3896_s11, %s3896_s11, %s3897_s12  }
  0x14   :  { %s3898_s15 = smov [#allocation2]   ;;  %s3799_s19 = scalar_lea.hbm %s4172_s0, 4096 }
  0x15   :  { %s21_s16 = sshll.u32 %s3898_s15, 4  ;;  %p3800_p8 = scmp.ne.s32.totalorder %s4172_s0, %s3799_s19  ;;  %s22_s16 = int_to_ptr.vmem [resolvable:$true] %s21_s16 }
  0x16   :  { %p3803_p9 = scmp.lt.u32.totalorder %s3799_s19, %s4172_s0 }
  0x18   :  { %p3805_p10 = pnand %p3803_p9, %p3800_p8 }
  0x1a   :  { %3808 = shalt.err (!%p3805_p10)
}
  0x1b   :  { %s3809_s24 = scalar_lea.vmem %s22_s16, 4096  ;;  %p3814_p12 = scmp.lt.s32.totalorder %s22_s16, %s22_s16 }
  0x1c   :  { %p3810_p11 = scmp.ne.s32.totalorder %s22_s16, %s3809_s24  ;;  %p3815_p13 = scmp.lt.s32.totalorder %s3809_s24, %s3809_s24 }
  0x1e   :  { %p3816_p0 = por %p3815_p13, %p3814_p12 }
  0x20   :  { %p3817_p1 = pnand %p3816_p0, %p3810_p11 }
  0x22   :  { %3820 = shalt.err (!%p3817_p1)
}
  0x23   :  { %s3899_s1 = smov 1024   ;;  %s3900_s25 = smov 64  }
  0x24   :  { %27 = dma.hbm_to_vmem [thread:$0]  %s4172_s0, 4096, %s22_s16, [#allocation3], %s3899_s1, %s3899_s1, %s3900_s25  }
  0x25   :  { %s3901_s28 = smov [#allocation7]   ;;  %s3821_s9 = scalar_lea.hbm %s4175_s3, 8192 }
  0x26   :  { %s47_s29 = sshll.u32 %s3901_s28, 4  ;;  %p3822_p2 = scmp.ne.s32.totalorder %s4175_s3, %s3821_s9  ;;  %s48_s29 = int_to_ptr.vmem [resolvable:$true] %s47_s29 }
  0x27   :  { %p3825_p3 = scmp.lt.u32.totalorder %s3821_s9, %s4175_s3 }
  0x29   :  { %p3827_p4 = pnand %p3825_p3, %p3822_p2 }
  0x2b   :  { %3830 = shalt.err (!%p3827_p4)
}
  0x2c   :  { %s3831_s14 = scalar_lea.vmem %s48_s29, 8192  ;;  %p3836_p6 = scmp.lt.s32.totalorder %s48_s29, %s48_s29 }
  0x2d   :  { %p3832_p5 = scmp.ne.s32.totalorder %s48_s29, %s3831_s14  ;;  %p3837_p7 = scmp.lt.s32.totalorder %s3831_s14, %s3831_s14 }
  0x2f   :  { %p3838_p8 = por %p3837_p7, %p3836_p6 }
  0x31   :  { %p3839_p9 = pnand %p3838_p8, %p3832_p5 }
  0x33   :  { %3842 = shalt.err (!%p3839_p9)
}
  0x34   :  { %s3902_s0 = smov 128   ;;  %s3903_s15 = smov 8  }
  0x35   :  { %53 = dma.hbm_to_vmem [thread:$0]  %s4175_s3, 8192, %s48_s29, [#allocation6], %s3902_s0, %s3902_s0, %s3903_s15  }
  0x36   :  { %s3904_s18 = smov [#allocation8]   ;;  %s3843_s22 = scalar_lea.hbm %s4177_s5, 4096 }
  0x37   :  { %s61_s19 = sshll.u32 %s3904_s18, 4  ;;  %p3844_p10 = scmp.ne.s32.totalorder %s4177_s5, %s3843_s22  ;;  %s62_s19 = int_to_ptr.vmem [resolvable:$true] %s61_s19 }
  0x38   :  { %p3847_p11 = scmp.lt.u32.totalorder %s3843_s22, %s4177_s5 }
  0x3a   :  { %p3849_p12 = pnand %p3847_p11, %p3844_p10 }
  0x3c   :  { %3852 = shalt.err (!%p3849_p12)
}
  0x3d   :  { %s3853_s26 = scalar_lea.vmem %s62_s19, 4096  ;;  %p3858_p0 = scmp.lt.s32.totalorder %s62_s19, %s62_s19 }
  0x3e   :  { %p3854_p13 = scmp.ne.s32.totalorder %s62_s19, %s3853_s26  ;;  %p3859_p1 = scmp.lt.s32.totalorder %s3853_s26, %s3853_s26 }
  0x40   :  { %p3860_p2 = por %p3859_p1, %p3858_p0 }
  0x42   :  { %p3861_p3 = pnand %p3860_p2, %p3854_p13 }
  0x44   :  { %3864 = shalt.err (!%p3861_p3)
}
  0x45   :  { %67 = dma.hbm_to_vmem [thread:$0]  %s4177_s5, 4096, %s62_s19, [#allocation9], %s3902_s0, %s3902_s0, %s3903_s15  }
  0x46   :  { %3887 = dma.done.wait [#allocation3], 4096  }
  0x47   :  { %3888 = vsyncadd [#allocation3], 4294963200 }
  0x48   :  { %3889 = dma.done.wait [#allocation6], 40960  }
  0x49   :  { %3890 = vsyncadd [#allocation6], 4294926336 }
  0x4a   :  { %3891 = dma.done.wait [#allocation9], 4096  }
  0x4b   :  { %3892 = vsyncadd [#allocation9], 4294963200  ;;  %v3297_v0 = vld [vmem:[#allocation5 + $0x4] ss:$16 sps:$4 sm:$0xff]   ;;  %v3301_v2 = vld [vmem:[#allocation5] ss:$16 sps:$4 sm:$0xff]  }
  0x4c   :  { %v3299_v1 = vld [vmem:[#allocation5 + $0x204] ss:$16 sps:$4 sm:$0xff]   ;;  %1688 = vmatprep.subr.bf16.mxu1 %v3297_v0  ;;  %v3302_v3 = vld [vmem:[#allocation5 + $0x200] ss:$16 sps:$4 sm:$0xff]   ;;  %v83_v46 = vld [vmem:[#allocation2 + $0x8] sm:$0xff]  ;;  %s3905_s8 = smov [#allocation10]  }
  0x4d   :  { %1741 = vmatprep.subr.bf16.mxu0 %v3299_v1  ;;  %v3303_v4 = vld [vmem:[#allocation5 + $0x24] ss:$16 sps:$4 sm:$0xff]   ;;  %1689 = vmatpush1.bf16.msra.mxu1 %v3301_v2  ;;  %v3307_v6 = vld [vmem:[#allocation5 + $0x20] ss:$16 sps:$4 sm:$0xff]   ;;  %v91_v49 = vld [vmem:[#allocation2 + $0x48] sm:$0xff]  ;;  %s2779_s9 = sshll.u32 %s3905_s8, 4  ;;  %s2780_s9 = int_to_ptr.vmem [resolvable:$true] %s2779_s9 }
  0x4e   :  { %1742 = vmatpush1.bf16.msra.mxu0 %v3302_v3  ;;  %v3305_v5 = vld [vmem:[#allocation5 + $0x224] ss:$16 sps:$4 sm:$0xff]   ;;  %1690 = vmatprep.subr.bf16.mxu1 %v3303_v4  ;;  %v3308_v7 = vld [vmem:[#allocation5 + $0x220] ss:$16 sps:$4 sm:$0xff]   ;;  %v4000_v50 = vpack.c.bf16 %v91_v49, %v83_v46  ;;  %v85_v51 = vld [vmem:[#allocation2 + $0x18] sm:$0xff]  ;;  %p3870_p5 = scmp.lt.s32.totalorder %s2780_s9, %s2780_s9 }
  0x4f   :  { %1743 = vmatprep.subr.bf16.mxu0 %v3305_v5  ;;  %v3309_v8 = vld [vmem:[#allocation5 + $0x44] ss:$16 sps:$4 sm:$0xff]   ;;  %v3313_v10 = vld [vmem:[#allocation5 + $0x40] ss:$16 sps:$4 sm:$0xff]   ;;  %v93_v52 = vld [vmem:[#allocation2 + $0x58] sm:$0xff] }
  0x50   :  { %v3311_v9 = vld [vmem:[#allocation5 + $0x244] ss:$16 sps:$4 sm:$0xff]   ;;  %v3314_v11 = vld [vmem:[#allocation5 + $0x240] ss:$16 sps:$4 sm:$0xff]   ;;  %v4002_v55 = vpack.c.bf16 %v93_v52, %v85_v51  ;;  %1720 = vmatprep.mubr.bf16.mxu1 %v4000_v50 }
  0x51   :  { %1691 = vmatpush1.bf16.msra.mxu1 %v3307_v6  ;;  %v3315_v12 = vld [vmem:[#allocation5 + $0x64] ss:$16 sps:$4 sm:$0xff]   ;;  %v3319_v14 = vld [vmem:[#allocation5 + $0x60] ss:$16 sps:$4 sm:$0xff]  }
  0x52   :  { %1744 = vmatpush1.bf16.msra.mxu0 %v3308_v7  ;;  %1692 = vmatprep.subr.bf16.mxu1 %v3309_v8  ;;  %v3317_v13 = vld [vmem:[#allocation5 + $0x264] ss:$16 sps:$4 sm:$0xff]   ;;  %v3320_v15 = vld [vmem:[#allocation5 + $0x260] ss:$16 sps:$4 sm:$0xff]  }
  0x53   :  { %1745 = vmatprep.subr.bf16.mxu0 %v3311_v9  ;;  %v3321_v16 = vld [vmem:[#allocation5 + $0x84] ss:$16 sps:$4 sm:$0xff]   ;;  %v3325_v18 = vld [vmem:[#allocation5 + $0x80] ss:$16 sps:$4 sm:$0xff]   ;;  %1773 = vmatprep.mubr.bf16.mxu0 %v4002_v55 }
  0x54   :  { %v3323_v17 = vld [vmem:[#allocation5 + $0x284] ss:$16 sps:$4 sm:$0xff]   ;;  %v3326_v19 = vld [vmem:[#allocation5 + $0x280] ss:$16 sps:$4 sm:$0xff]  }
  0x55   :  { %1693 = vmatpush1.bf16.msra.mxu1 %v3313_v10  ;;  %v3327_v20 = vld [vmem:[#allocation5 + $0xa4] ss:$16 sps:$4 sm:$0xff]   ;;  %v3331_v22 = vld [vmem:[#allocation5 + $0xa0] ss:$16 sps:$4 sm:$0xff]  }
  0x56   :  { %1746 = vmatpush1.bf16.msra.mxu0 %v3314_v11  ;;  %1694 = vmatprep.subr.bf16.mxu1 %v3315_v12  ;;  %v3329_v21 = vld [vmem:[#allocation5 + $0x2a4] ss:$16 sps:$4 sm:$0xff]   ;;  %v3332_v23 = vld [vmem:[#allocation5 + $0x2a0] ss:$16 sps:$4 sm:$0xff]   ;;  %v3398_v11 = vld [vmem:[#allocation5 + $0xc] ss:$16 sps:$4 sm:$0xff]  }
  0x57   :  { %1747 = vmatprep.subr.bf16.mxu0 %v3317_v13  ;;  %v3333_v24 = vld [vmem:[#allocation5 + $0xc4] ss:$16 sps:$4 sm:$0xff]   ;;  %v3337_v26 = vld [vmem:[#allocation5 + $0xc0] ss:$16 sps:$4 sm:$0xff]  }
  0x58   :  { %v3335_v25 = vld [vmem:[#allocation5 + $0x2c4] ss:$16 sps:$4 sm:$0xff]   ;;  %v3338_v27 = vld [vmem:[#allocation5 + $0x2c0] ss:$16 sps:$4 sm:$0xff]  }
  0x59   :  { %1695 = vmatpush1.bf16.msra.mxu1 %v3319_v14  ;;  %v3339_v28 = vld [vmem:[#allocation5 + $0xe4] ss:$16 sps:$4 sm:$0xff]   ;;  %v3343_v30 = vld [vmem:[#allocation5 + $0xe0] ss:$16 sps:$4 sm:$0xff]   ;;  %v3396_v14 = vld [vmem:[#allocation5 + $0x8] ss:$16 sps:$4 sm:$0xff]  }
  0x5a   :  { %1748 = vmatpush1.bf16.msra.mxu0 %v3320_v15  ;;  %1696 = vmatprep.subr.bf16.mxu1 %v3321_v16  ;;  %v3341_v29 = vld [vmem:[#allocation5 + $0x2e4] ss:$16 sps:$4 sm:$0xff]   ;;  %v3344_v31 = vld [vmem:[#allocation5 + $0x2e0] ss:$16 sps:$4 sm:$0xff]  }
  0x5b   :  { %1749 = vmatprep.subr.bf16.mxu0 %v3323_v17  ;;  %v3345_v32 = vld [vmem:[#allocation5 + $0x104] ss:$16 sps:$4 sm:$0xff]   ;;  %v3349_v34 = vld [vmem:[#allocation5 + $0x100] ss:$16 sps:$4 sm:$0xff]   ;;  %v3404_v17 = vld [vmem:[#allocation5 + $0x2c] ss:$16 sps:$4 sm:$0xff]  }
  0x5c   :  { %v3347_v33 = vld [vmem:[#allocation5 + $0x304] ss:$16 sps:$4 sm:$0xff]   ;;  %v3350_v35 = vld [vmem:[#allocation5 + $0x300] ss:$16 sps:$4 sm:$0xff]  }
  0x5d   :  { %1697 = vmatpush1.bf16.msra.mxu1 %v3325_v18  ;;  %v3351_v36 = vld [vmem:[#allocation5 + $0x124] ss:$16 sps:$4 sm:$0xff]   ;;  %v3355_v38 = vld [vmem:[#allocation5 + $0x120] ss:$16 sps:$4 sm:$0xff]  }
  0x5e   :  { %1750 = vmatpush1.bf16.msra.mxu0 %v3326_v19  ;;  %1698 = vmatprep.subr.bf16.mxu1 %v3327_v20  ;;  %v3353_v37 = vld [vmem:[#allocation5 + $0x324] ss:$16 sps:$4 sm:$0xff]   ;;  %v3356_v39 = vld [vmem:[#allocation5 + $0x320] ss:$16 sps:$4 sm:$0xff]   ;;  %v3402_v19 = vld [vmem:[#allocation5 + $0x28] ss:$16 sps:$4 sm:$0xff]  }
  0x5f   :  { %1751 = vmatprep.subr.bf16.mxu0 %v3329_v21  ;;  %v3357_v40 = vld [vmem:[#allocation5 + $0x144] ss:$16 sps:$4 sm:$0xff]   ;;  %v3361_v42 = vld [vmem:[#allocation5 + $0x140] ss:$16 sps:$4 sm:$0xff]   ;;  %v3410_v21 = vld [vmem:[#allocation5 + $0x4c] ss:$16 sps:$4 sm:$0xff]  }
  0x60   :  { %v3359_v41 = vld [vmem:[#allocation5 + $0x344] ss:$16 sps:$4 sm:$0xff]   ;;  %v3362_v43 = vld [vmem:[#allocation5 + $0x340] ss:$16 sps:$4 sm:$0xff]  }
  0x61   :  { %1699 = vmatpush1.bf16.msra.mxu1 %v3331_v22  ;;  %v3363_v44 = vld [vmem:[#allocation5 + $0x164] ss:$16 sps:$4 sm:$0xff]   ;;  %v3367_v47 = vld [vmem:[#allocation5 + $0x160] ss:$16 sps:$4 sm:$0xff]  }
  0x62   :  { %1752 = vmatpush1.bf16.msra.mxu0 %v3332_v23  ;;  %1700 = vmatprep.subr.bf16.mxu1 %v3333_v24  ;;  %v3365_v45 = vld [vmem:[#allocation5 + $0x364] ss:$16 sps:$4 sm:$0xff]   ;;  %v3368_v48 = vld [vmem:[#allocation5 + $0x360] ss:$16 sps:$4 sm:$0xff]   ;;  %v3408_v23 = vld [vmem:[#allocation5 + $0x48] ss:$16 sps:$4 sm:$0xff]  }
  0x63   :  { %1753 = vmatprep.subr.bf16.mxu0 %v3335_v25  ;;  %v3369_v53 = vld [vmem:[#allocation5 + $0x184] ss:$16 sps:$4 sm:$0xff]   ;;  %v3373_v56 = vld [vmem:[#allocation5 + $0x180] ss:$16 sps:$4 sm:$0xff]   ;;  %v3416_v25 = vld [vmem:[#allocation5 + $0x6c] ss:$16 sps:$4 sm:$0xff]  }
  0x64   :  { %v3371_v54 = vld [vmem:[#allocation5 + $0x384] ss:$16 sps:$4 sm:$0xff]   ;;  %v3374_v57 = vld [vmem:[#allocation5 + $0x380] ss:$16 sps:$4 sm:$0xff]  }
  0x65   :  { %1701 = vmatpush1.bf16.msra.mxu1 %v3337_v26  ;;  %v3375_v58 = vld [vmem:[#allocation5 + $0x1a4] ss:$16 sps:$4 sm:$0xff]   ;;  %v3379_v60 = vld [vmem:[#allocation5 + $0x1a0] ss:$16 sps:$4 sm:$0xff]  }
  0x66   :  { %1754 = vmatpush1.bf16.msra.mxu0 %v3338_v27  ;;  %1702 = vmatprep.subr.bf16.mxu1 %v3339_v28  ;;  %v3377_v59 = vld [vmem:[#allocation5 + $0x3a4] ss:$16 sps:$4 sm:$0xff]   ;;  %v3380_v61 = vld [vmem:[#allocation5 + $0x3a0] ss:$16 sps:$4 sm:$0xff]   ;;  %v3414_v27 = vld [vmem:[#allocation5 + $0x68] ss:$16 sps:$4 sm:$0xff]  }
  0x67   :  { %1755 = vmatprep.subr.bf16.mxu0 %v3341_v29  ;;  %v3381_v62 = vld [vmem:[#allocation5 + $0x1c4] ss:$16 sps:$4 sm:$0xff]   ;;  %v3385_v0 = vld [vmem:[#allocation5 + $0x1c0] ss:$16 sps:$4 sm:$0xff]   ;;  %v3422_v29 = vld [vmem:[#allocation5 + $0x8c] ss:$16 sps:$4 sm:$0xff]  }
  0x68   :  { %v3383_v63 = vld [vmem:[#allocation5 + $0x3c4] ss:$16 sps:$4 sm:$0xff]   ;;  %v3386_v1 = vld [vmem:[#allocation5 + $0x3c0] ss:$16 sps:$4 sm:$0xff]  }
  0x69   :  { %1703 = vmatpush1.bf16.msra.mxu1 %v3343_v30  ;;  %v3387_v2 = vld [vmem:[#allocation5 + $0x1e4] ss:$16 sps:$4 sm:$0xff]   ;;  %v3391_v4 = vld [vmem:[#allocation5 + $0x1e0] ss:$16 sps:$4 sm:$0xff]  }
  0x6a   :  { %1756 = vmatpush1.bf16.msra.mxu0 %v3344_v31  ;;  %1704 = vmatprep.subr.bf16.mxu1 %v3345_v32  ;;  %v3389_v3 = vld [vmem:[#allocation5 + $0x3e4] ss:$16 sps:$4 sm:$0xff]   ;;  %v3392_v5 = vld [vmem:[#allocation5 + $0x3e0] ss:$16 sps:$4 sm:$0xff]   ;;  %v3420_v31 = vld [vmem:[#allocation5 + $0x88] ss:$16 sps:$4 sm:$0xff]  }
  0x6b   :  { %1757 = vmatprep.subr.bf16.mxu0 %v3347_v33  ;;  %v82_v6 = vld [vmem:[#allocation2] sm:$0xff]  ;;  %v84_v9 = vld [vmem:[#allocation2 + $0x10] sm:$0xff]  ;;  %v3428_v33 = vld [vmem:[#allocation5 + $0xac] ss:$16 sps:$4 sm:$0xff]  }
  0x6c   :  { %v90_v7 = vld [vmem:[#allocation2 + $0x40] sm:$0xff]  ;;  %v92_v10 = vld [vmem:[#allocation2 + $0x50] sm:$0xff] }
  0x6d   :  { %1705 = vmatpush1.bf16.msra.mxu1 %v3349_v34  ;;  %v3395_v8 = vld [vmem:[#allocation5 + $0x404] ss:$16 sps:$4 sm:$0xff]   ;;  %v4006_v12 = vpack.c.bf16 %v90_v7, %v82_v6  ;;  %v3393_v13 = vld [vmem:[#allocation5 + $0x400] ss:$16 sps:$4 sm:$0xff]   ;;  %v4008_v15 = vpack.c.bf16 %v92_v10, %v84_v9  ;;  %v3456_v7 = vld [vmem:[#allocation5 + $0x148] ss:$16 sps:$4 sm:$0xff]  }
  0x6e   :  { %1758 = vmatpush1.bf16.msra.mxu0 %v3350_v35  ;;  %1706 = vmatprep.subr.bf16.mxu1 %v3351_v36  ;;  %v3401_v16 = vld [vmem:[#allocation5 + $0x424] ss:$16 sps:$4 sm:$0xff]   ;;  %v3399_v18 = vld [vmem:[#allocation5 + $0x420] ss:$16 sps:$4 sm:$0xff]   ;;  %v3426_v35 = vld [vmem:[#allocation5 + $0xa8] ss:$16 sps:$4 sm:$0xff]  }
  0x6f   :  { %1759 = vmatprep.subr.bf16.mxu0 %v3353_v37  ;;  %v3407_v20 = vld [vmem:[#allocation5 + $0x444] ss:$16 sps:$4 sm:$0xff]   ;;  %v3405_v22 = vld [vmem:[#allocation5 + $0x440] ss:$16 sps:$4 sm:$0xff]   ;;  %v99_v36 = vld [vmem:[#allocation2 + $0x88] sm:$0xff] }
  0x70   :  { %v3413_v24 = vld [vmem:[#allocation5 + $0x464] ss:$16 sps:$4 sm:$0xff]   ;;  %v3411_v26 = vld [vmem:[#allocation5 + $0x460] ss:$16 sps:$4 sm:$0xff]   ;;  %v107_v37 = vld [vmem:[#allocation2 + $0xc8] sm:$0xff] }
  0x71   :  { %1707 = vmatpush1.bf16.msra.mxu1 %v3355_v38  ;;  %v3419_v28 = vld [vmem:[#allocation5 + $0x484] ss:$16 sps:$4 sm:$0xff]   ;;  %v3417_v30 = vld [vmem:[#allocation5 + $0x480] ss:$16 sps:$4 sm:$0xff]   ;;  %v3464_v9 = vld [vmem:[#allocation5 + $0x16c] ss:$16 sps:$4 sm:$0xff]  }
  0x72   :  { %1760 = vmatpush1.bf16.msra.mxu0 %v3356_v39  ;;  %1708 = vmatprep.subr.bf16.mxu1 %v3357_v40  ;;  %v3425_v32 = vld [vmem:[#allocation5 + $0x4a4] ss:$16 sps:$4 sm:$0xff]   ;;  %v3423_v34 = vld [vmem:[#allocation5 + $0x4a0] ss:$16 sps:$4 sm:$0xff]   ;;  %v4012_v40 = vpack.c.bf16 %v107_v37, %v99_v36 }
  0x73   :  { %1761 = vmatprep.subr.bf16.mxu0 %v3359_v41  ;;  %v98_v38 = vld [vmem:[#allocation2 + $0x80] sm:$0xff]  ;;  %v100_v49 = vld [vmem:[#allocation2 + $0x90] sm:$0xff] }
  0x74   :  { %v106_v39 = vld [vmem:[#allocation2 + $0xc0] sm:$0xff]  ;;  %v108_v51 = vld [vmem:[#allocation2 + $0xd0] sm:$0xff] }
  0x75   :  { %1709 = vmatpush1.bf16.msra.mxu1 %v3361_v42  ;;  %v4014_v41 = vpack.c.bf16 %v106_v39, %v98_v38  ;;  %v101_v42 = vld [vmem:[#allocation2 + $0x98] sm:$0xff]  ;;  %v3437_v52 = vld [vmem:[#allocation5 + $0x4e4] ss:$16 sps:$4 sm:$0xff]   ;;  %v3453_v6 = vld [vmem:[#allocation5 + $0x540] ss:$16 sps:$4 sm:$0xff]  }
  0x76   :  { %1762 = vmatpush1.bf16.msra.mxu0 %v3362_v43  ;;  %1710 = vmatprep.subr.bf16.mxu1 %v3363_v44  ;;  %v109_v43 = vld [vmem:[#allocation2 + $0xd8] sm:$0xff]  ;;  %v3431_v44 = vld [vmem:[#allocation5 + $0x4c4] ss:$16 sps:$4 sm:$0xff]   ;;  %v3459_v10 = vld [vmem:[#allocation5 + $0x560] ss:$16 sps:$4 sm:$0xff]  }
  0x77   :  { %1763 = vmatprep.subr.bf16.mxu0 %v3365_v45  ;;  %v3434_v45 = vld [vmem:[#allocation5 + $0xcc] ss:$16 sps:$4 sm:$0xff]   ;;  %v4016_v46 = vpack.c.bf16 %v109_v43, %v101_v42  ;;  %v3497_v37 = vld [vmem:[#allocation5 + $0x624] ss:$16 sps:$4 sm:$0xff]   ;;  %v3495_v43 = vld [vmem:[#allocation5 + $0x620] ss:$16 sps:$4 sm:$0xff]  }
  0x78   :  { %v3500_v38 = vld [vmem:[#allocation5 + $0x22c] ss:$16 sps:$4 sm:$0xff]  }
  0x79   :  { %1711 = vmatpush1.bf16.msra.mxu1 %v3367_v47  ;;  %v3429_v47 = vld [vmem:[#allocation5 + $0x4c0] ss:$16 sps:$4 sm:$0xff]   ;;  %v103_v39 = vld [vmem:[#allocation2 + $0xa8] sm:$0xff] }
  0x7a   :  { %1764 = vmatpush1.bf16.msra.mxu0 %v3368_v48  ;;  %1712 = vmatprep.subr.bf16.mxu1 %v3369_v53  ;;  %v3432_v48 = vld [vmem:[#allocation5 + $0xc8] ss:$16 sps:$4 sm:$0xff]   ;;  %v4021_v53 = vpack.c.bf16 %v108_v51, %v100_v49  ;;  %v110_v49 = vld [vmem:[#allocation2 + $0xe0] sm:$0xff]  ;;  %v3506_v51 = vld [vmem:[#allocation5 + $0x24c] ss:$16 sps:$4 sm:$0xff]  }
  0x7b   :  { %1765 = vmatprep.subr.bf16.mxu0 %v3371_v54  ;;  %v3440_v54 = vld [vmem:[#allocation5 + $0xec] ss:$16 sps:$4 sm:$0xff]  }
  0x7c   :  { %v111_v42 = vld [vmem:[#allocation2 + $0xe8] sm:$0xff] }
  0x7d   :  { %1713 = vmatpush1.bf16.msra.mxu1 %v3373_v56  ;;  %v87_v56 = vld [vmem:[#allocation2 + $0x28] sm:$0xff] }
  0x7e   :  { %1766 = vmatpush1.bf16.msra.mxu0 %v3374_v57  ;;  %1714 = vmatprep.subr.bf16.mxu1 %v3375_v58  ;;  %v95_v57 = vld [vmem:[#allocation2 + $0x68] sm:$0xff]  ;;  %v3435_v58 = vld [vmem:[#allocation5 + $0x4e0] ss:$16 sps:$4 sm:$0xff]  }
  0x7f   :  { %1767 = vmatprep.subr.bf16.mxu0 %v3377_v59  ;;  %v3438_v59 = vld [vmem:[#allocation5 + $0xe8] ss:$16 sps:$4 sm:$0xff]  }
  0x81   :  { %1715 = vmatpush1.bf16.msra.mxu1 %v3379_v60  ;;  %v4025_v60 = vpack.c.bf16 %v95_v57, %v87_v56  ;;  %v3509_v57 = vld [vmem:[#allocation5 + $0x664] ss:$16 sps:$4 sm:$0xff]  }
  0x82   :  { %1768 = vmatpush1.bf16.msra.mxu0 %v3380_v61  ;;  %1716 = vmatprep.subr.bf16.mxu1 %v3381_v62  ;;  %v3443_v61 = vld [vmem:[#allocation5 + $0x504] ss:$16 sps:$4 sm:$0xff]   ;;  %v3446_v62 = vld [vmem:[#allocation5 + $0x10c] ss:$16 sps:$4 sm:$0xff]  }
  0x83   :  { %1769 = vmatprep.subr.bf16.mxu0 %v3383_v63  ;;  %v3441_v63 = vld [vmem:[#allocation5 + $0x500] ss:$16 sps:$4 sm:$0xff]  }
  0x85   :  { %1717 = vmatpush1.bf16.msra.mxu1 %v3385_v0  ;;  %v3444_v0 = vld [vmem:[#allocation5 + $0x108] ss:$16 sps:$4 sm:$0xff]  }
  0x86   :  { %1770 = vmatpush1.bf16.msra.mxu0 %v3386_v1  ;;  %1718 = vmatprep.subr.bf16.mxu1 %v3387_v2  ;;  %v3449_v1 = vld [vmem:[#allocation5 + $0x524] ss:$16 sps:$4 sm:$0xff]   ;;  %v3447_v2 = vld [vmem:[#allocation5 + $0x520] ss:$16 sps:$4 sm:$0xff]  }
  0x87   :  { %1771 = vmatprep.subr.bf16.mxu0 %v3389_v3  ;;  %v3450_v3 = vld [vmem:[#allocation5 + $0x128] ss:$16 sps:$4 sm:$0xff]  }
  0x89   :  { %1719 = vmatpush1.bf16.msra.mxu1 %v3391_v4  ;;  %v3455_v4 = vld [vmem:[#allocation5 + $0x544] ss:$16 sps:$4 sm:$0xff]  }
  0x8a   :  { %1772 = vmatpush1.bf16.msra.mxu0 %v3392_v5  ;;  %1900 = vmatprep.subr.bf16.mxu1 %v3398_v11  ;;  %v3458_v5 = vld [vmem:[#allocation5 + $0x14c] ss:$16 sps:$4 sm:$0xff]   ;;  %v3462_v11 = vld [vmem:[#allocation5 + $0x168] ss:$16 sps:$4 sm:$0xff]  }
  0x8b   :  { %1794 = vmatprep.subr.bf16.mxu0 %v3395_v8  ;;  %v3461_v8 = vld [vmem:[#allocation5 + $0x564] ss:$16 sps:$4 sm:$0xff]  }
  0x8c   :  { %1721 = vmatmul.mubr.bf16.vlgmr.msra.gmra.mrb[0].mxu1 %v4006_v12 }
  0x8d   :  { %1774 = vmatmul.mubr.bf16.vlgmr.msra.gmra.mrb[0].mxu0 %v4008_v15  ;;  %1901 = vmatpush1.bf16.msra.mxu1 %v3396_v14  ;;  %v3470_v14 = vld [vmem:[#allocation5 + $0x18c] ss:$16 sps:$4 sm:$0xff]  }
  0x8e   :  { %1795 = vmatpush1.bf16.msra.mxu0 %v3393_v13  ;;  %1902 = vmatprep.subr.bf16.mxu1 %v3404_v17  ;;  %v3467_v13 = vld [vmem:[#allocation5 + $0x584] ss:$16 sps:$4 sm:$0xff]   ;;  %v3468_v17 = vld [vmem:[#allocation5 + $0x188] ss:$16 sps:$4 sm:$0xff]  }
  0x8f   :  { %1796 = vmatprep.subr.bf16.mxu0 %v3401_v16  ;;  %1730 = vmatprep.mubr.bf16.mxu1 %v4012_v40  ;;  %v3465_v16 = vld [vmem:[#allocation5 + $0x580] ss:$16 sps:$4 sm:$0xff]  }
  0x90   :  { %1783 = vmatprep.mubr.bf16.mxu0 %v4016_v46 }
  0x91   :  { %1903 = vmatpush1.bf16.msra.mxu1 %v3402_v19  ;;  %v3476_v19 = vld [vmem:[#allocation5 + $0x1ac] ss:$16 sps:$4 sm:$0xff]  }
  0x92   :  { %1797 = vmatpush1.bf16.msra.mxu0 %v3399_v18  ;;  %1904 = vmatprep.subr.bf16.mxu1 %v3410_v21  ;;  %v3473_v18 = vld [vmem:[#allocation5 + $0x5a4] ss:$16 sps:$4 sm:$0xff]   ;;  %v3474_v21 = vld [vmem:[#allocation5 + $0x1a8] ss:$16 sps:$4 sm:$0xff]  }
  0x93   :  { %1798 = vmatprep.subr.bf16.mxu0 %v3407_v20  ;;  %v3471_v20 = vld [vmem:[#allocation5 + $0x5a0] ss:$16 sps:$4 sm:$0xff]  }
  0x94   :  { %1731 = vmatmul.mubr.bf16.gmra.mrb[4].mxu1 %v4014_v41 }
  0x95   :  { %1905 = vmatpush1.bf16.msra.mxu1 %v3408_v23  ;;  %1784 = vmatmul.mubr.bf16.gmra.mrb[4].mxu0 %v4021_v53  ;;  %v3482_v23 = vld [vmem:[#allocation5 + $0x1cc] ss:$16 sps:$4 sm:$0xff]  }
  0x96   :  { %1799 = vmatpush1.bf16.msra.mxu0 %v3405_v22  ;;  %1906 = vmatprep.subr.bf16.mxu1 %v3416_v25  ;;  %v3479_v22 = vld [vmem:[#allocation5 + $0x5c4] ss:$16 sps:$4 sm:$0xff]   ;;  %v3480_v25 = vld [vmem:[#allocation5 + $0x1c8] ss:$16 sps:$4 sm:$0xff]  }
  0x97   :  { %1800 = vmatprep.subr.bf16.mxu0 %v3413_v24  ;;  %1932 = vmatprep.mubr.bf16.mxu1 %v4000_v50  ;;  %v3452_v50 = vld [vmem:[#allocation5 + $0x12c] ss:$16 sps:$4 sm:$0xff]   ;;  %v3477_v24 = vld [vmem:[#allocation5 + $0x5c0] ss:$16 sps:$4 sm:$0xff]  }
  0x98   :  { %1826 = vmatprep.mubr.bf16.mxu0 %v4025_v60 }
  0x99   :  { %1907 = vmatpush1.bf16.msra.mxu1 %v3414_v27  ;;  %v3488_v27 = vld [vmem:[#allocation5 + $0x1ec] ss:$16 sps:$4 sm:$0xff]  }
  0x9a   :  { %1801 = vmatpush1.bf16.msra.mxu0 %v3411_v26  ;;  %1908 = vmatprep.subr.bf16.mxu1 %v3422_v29  ;;  %v3485_v26 = vld [vmem:[#allocation5 + $0x5e4] ss:$16 sps:$4 sm:$0xff]   ;;  %v3486_v29 = vld [vmem:[#allocation5 + $0x1e8] ss:$16 sps:$4 sm:$0xff]  }
  0x9b   :  { %1802 = vmatprep.subr.bf16.mxu0 %v3419_v28  ;;  %v3483_v28 = vld [vmem:[#allocation5 + $0x5e0] ss:$16 sps:$4 sm:$0xff]  }
  0x9d   :  { %1909 = vmatpush1.bf16.msra.mxu1 %v3420_v31  ;;  %v86_v31 = vld [vmem:[#allocation2 + $0x20] sm:$0xff] }
  0x9e   :  { %1803 = vmatpush1.bf16.msra.mxu0 %v3417_v30  ;;  %1910 = vmatprep.subr.bf16.mxu1 %v3428_v33  ;;  %v3491_v30 = vld [vmem:[#allocation5 + $0x604] ss:$16 sps:$4 sm:$0xff]   ;;  %v3494_v33 = vld [vmem:[#allocation5 + $0x20c] ss:$16 sps:$4 sm:$0xff]  }
  0x9f   :  { %1804 = vmatprep.subr.bf16.mxu0 %v3425_v32  ;;  %v94_v32 = vld [vmem:[#allocation2 + $0x60] sm:$0xff] }
  0xa0   :  { %v4028_v36 = vpack.c.bf16 %v94_v32, %v86_v31  ;;  %v3566_v31 = vld [vmem:[#allocation5 + $0x38c] ss:$16 sps:$4 sm:$0xff]   ;;  %v3561_v32 = vld [vmem:[#allocation5 + $0x780] ss:$16 sps:$4 sm:$0xff]  }
  0xa1   :  { %1911 = vmatpush1.bf16.msra.mxu1 %v3426_v35  ;;  %v3492_v35 = vld [vmem:[#allocation5 + $0x208] ss:$16 sps:$4 sm:$0xff]  }
  0xa2   :  { %1805 = vmatpush1.bf16.msra.mxu0 %v3423_v34  ;;  %1912 = vmatprep.subr.bf16.mxu1 %v3434_v45  ;;  %v3489_v34 = vld [vmem:[#allocation5 + $0x600] ss:$16 sps:$4 sm:$0xff]   ;;  %v4030_v45 = vpack.c.bf16 %v111_v42, %v103_v39  ;;  %v3575_v39 = vld [vmem:[#allocation5 + $0x7c4] ss:$16 sps:$4 sm:$0xff]   ;;  %v3578_v42 = vld [vmem:[#allocation5 + $0x3cc] ss:$16 sps:$4 sm:$0xff]  }
  0xa3   :  { %1806 = vmatprep.subr.bf16.mxu0 %v3431_v44  ;;  %v3498_v44 = vld [vmem:[#allocation5 + $0x228] ss:$16 sps:$4 sm:$0xff]  }
  0xa5   :  { %1913 = vmatpush1.bf16.msra.mxu1 %v3432_v48  ;;  %v102_v48 = vld [vmem:[#allocation2 + $0xa0] sm:$0xff] }
  0xa6   :  { %1807 = vmatpush1.bf16.msra.mxu0 %v3429_v47  ;;  %1914 = vmatprep.subr.bf16.mxu1 %v3440_v54  ;;  %v3503_v47 = vld [vmem:[#allocation5 + $0x644] ss:$16 sps:$4 sm:$0xff]   ;;  %v3504_v54 = vld [vmem:[#allocation5 + $0x248] ss:$16 sps:$4 sm:$0xff]   ;;  %v4036_v56 = vpack.c.bf16 %v110_v49, %v102_v48  ;;  %v3584_v48 = vld [vmem:[#allocation5 + $0x3ec] ss:$16 sps:$4 sm:$0xff]  }
  0xa7   :  { %1808 = vmatprep.subr.bf16.mxu0 %v3437_v52  ;;  %v3501_v52 = vld [vmem:[#allocation5 + $0x640] ss:$16 sps:$4 sm:$0xff]  }
  0xa8   :  { %v3579_v49 = vld [vmem:[#allocation5 + $0x7e0] ss:$16 sps:$4 sm:$0xff]  }
  0xa9   :  { %1915 = vmatpush1.bf16.msra.mxu1 %v3438_v59  ;;  %v3512_v59 = vld [vmem:[#allocation5 + $0x26c] ss:$16 sps:$4 sm:$0xff]  }
  0xaa   :  { %1809 = vmatpush1.bf16.msra.mxu0 %v3435_v58  ;;  %1916 = vmatprep.subr.bf16.mxu1 %v3446_v62  ;;  %v97_v58 = vld [vmem:[#allocation2 + $0x78] sm:$0xff] }
  0xab   :  { %1810 = vmatprep.subr.bf16.mxu0 %v3443_v61  ;;  %v3510_v62 = vld [vmem:[#allocation5 + $0x268] ss:$16 sps:$4 sm:$0xff]  }
  0xad   :  { %1917 = vmatpush1.bf16.msra.mxu1 %v3444_v0  ;;  %v3518_v0 = vld [vmem:[#allocation5 + $0x28c] ss:$16 sps:$4 sm:$0xff]  }
  0xae   :  { %1811 = vmatpush1.bf16.msra.mxu0 %v3441_v63  ;;  %1918 = vmatprep.subr.bf16.mxu1 %v3452_v50  ;;  %v3515_v63 = vld [vmem:[#allocation5 + $0x684] ss:$16 sps:$4 sm:$0xff]   ;;  %v3516_v50 = vld [vmem:[#allocation5 + $0x288] ss:$16 sps:$4 sm:$0xff]  }
  0xaf   :  { %1812 = vmatprep.subr.bf16.mxu0 %v3449_v1  ;;  %v3513_v1 = vld [vmem:[#allocation5 + $0x680] ss:$16 sps:$4 sm:$0xff]  }
  0xb1   :  { %1919 = vmatpush1.bf16.msra.mxu1 %v3450_v3  ;;  %v3519_v3 = vld [vmem:[#allocation5 + $0x6a0] ss:$16 sps:$4 sm:$0xff]  }
  0xb2   :  { %1813 = vmatpush1.bf16.msra.mxu0 %v3447_v2  ;;  %1920 = vmatprep.subr.bf16.mxu1 %v3458_v5  ;;  %v3521_v2 = vld [vmem:[#allocation5 + $0x6a4] ss:$16 sps:$4 sm:$0xff]  }
  0xb3   :  { %1814 = vmatprep.subr.bf16.mxu0 %v3455_v4  ;;  %v3522_v4 = vld [vmem:[#allocation5 + $0x2a8] ss:$16 sps:$4 sm:$0xff]   ;;  %v3527_v5 = vld [vmem:[#allocation5 + $0x6c4] ss:$16 sps:$4 sm:$0xff]  }
  0xb5   :  { %1921 = vmatpush1.bf16.msra.mxu1 %v3456_v7  ;;  %v3525_v7 = vld [vmem:[#allocation5 + $0x6c0] ss:$16 sps:$4 sm:$0xff]  }
  0xb6   :  { %1815 = vmatpush1.bf16.msra.mxu0 %v3453_v6  ;;  %1922 = vmatprep.subr.bf16.mxu1 %v3464_v9  ;;  %v3530_v6 = vld [vmem:[#allocation5 + $0x2cc] ss:$16 sps:$4 sm:$0xff]  }
  0xb7   :  { %1816 = vmatprep.subr.bf16.mxu0 %v3461_v8  ;;  %v3528_v8 = vld [vmem:[#allocation5 + $0x2c8] ss:$16 sps:$4 sm:$0xff]   ;;  %v3536_v9 = vld [vmem:[#allocation5 + $0x2ec] ss:$16 sps:$4 sm:$0xff]  }
  0xb9   :  { %1923 = vmatpush1.bf16.msra.mxu1 %v3462_v11  ;;  %v3534_v11 = vld [vmem:[#allocation5 + $0x2e8] ss:$16 sps:$4 sm:$0xff]  }
  0xba   :  { %1817 = vmatpush1.bf16.msra.mxu0 %v3459_v10  ;;  %1924 = vmatprep.subr.bf16.mxu1 %v3470_v14  ;;  %v3531_v10 = vld [vmem:[#allocation5 + $0x6e0] ss:$16 sps:$4 sm:$0xff]   ;;  %v3542_v14 = vld [vmem:[#allocation5 + $0x30c] ss:$16 sps:$4 sm:$0xff]  }
  0xbb   :  { %1818 = vmatprep.subr.bf16.mxu0 %v3467_v13  ;;  %v3539_v13 = vld [vmem:[#allocation5 + $0x704] ss:$16 sps:$4 sm:$0xff]  }
  0xbd   :  { %1925 = vmatpush1.bf16.msra.mxu1 %v3468_v17  ;;  %v3540_v17 = vld [vmem:[#allocation5 + $0x308] ss:$16 sps:$4 sm:$0xff]  }
  0xbe   :  { %1819 = vmatpush1.bf16.msra.mxu0 %v3465_v16  ;;  %1926 = vmatprep.subr.bf16.mxu1 %v3476_v19  ;;  %v3537_v16 = vld [vmem:[#allocation5 + $0x700] ss:$16 sps:$4 sm:$0xff]   ;;  %v3548_v19 = vld [vmem:[#allocation5 + $0x32c] ss:$16 sps:$4 sm:$0xff]  }
  0xbf   :  { %1820 = vmatprep.subr.bf16.mxu0 %v3473_v18  ;;  %v3545_v18 = vld [vmem:[#allocation5 + $0x724] ss:$16 sps:$4 sm:$0xff]  }
  0xc1   :  { %1927 = vmatpush1.bf16.msra.mxu1 %v3474_v21  ;;  %v3546_v21 = vld [vmem:[#allocation5 + $0x328] ss:$16 sps:$4 sm:$0xff]  }
  0xc2   :  { %1821 = vmatpush1.bf16.msra.mxu0 %v3471_v20  ;;  %1928 = vmatprep.subr.bf16.mxu1 %v3482_v23  ;;  %v3543_v20 = vld [vmem:[#allocation5 + $0x720] ss:$16 sps:$4 sm:$0xff]   ;;  %v3554_v23 = vld [vmem:[#allocation5 + $0x34c] ss:$16 sps:$4 sm:$0xff]  }
  0xc3   :  { %1822 = vmatprep.subr.bf16.mxu0 %v3479_v22  ;;  %v3551_v22 = vld [vmem:[#allocation5 + $0x744] ss:$16 sps:$4 sm:$0xff]  }
  0xc5   :  { %1929 = vmatpush1.bf16.msra.mxu1 %v3480_v25  ;;  %v3552_v25 = vld [vmem:[#allocation5 + $0x348] ss:$16 sps:$4 sm:$0xff]  }
  0xc6   :  { %1823 = vmatpush1.bf16.msra.mxu0 %v3477_v24  ;;  %1930 = vmatprep.subr.bf16.mxu1 %v3488_v27  ;;  %v3549_v24 = vld [vmem:[#allocation5 + $0x740] ss:$16 sps:$4 sm:$0xff]   ;;  %v3560_v27 = vld [vmem:[#allocation5 + $0x36c] ss:$16 sps:$4 sm:$0xff]  }
  0xc7   :  { %1824 = vmatprep.subr.bf16.mxu0 %v3485_v26  ;;  %v3557_v26 = vld [vmem:[#allocation5 + $0x764] ss:$16 sps:$4 sm:$0xff]  }
  0xc9   :  { %1931 = vmatpush1.bf16.msra.mxu1 %v3486_v29  ;;  %v3558_v29 = vld [vmem:[#allocation5 + $0x368] ss:$16 sps:$4 sm:$0xff]  }
  0xca   :  { %1825 = vmatpush1.bf16.msra.mxu0 %v3483_v28  ;;  %1953 = vmatprep.subr.bf16.mxu1 %v3494_v33  ;;  %v3555_v28 = vld [vmem:[#allocation5 + $0x760] ss:$16 sps:$4 sm:$0xff]   ;;  %v3564_v33 = vld [vmem:[#allocation5 + $0x388] ss:$16 sps:$4 sm:$0xff]  }
  0xcb   :  { %1847 = vmatprep.subr.bf16.mxu0 %v3491_v30  ;;  %v3563_v30 = vld [vmem:[#allocation5 + $0x784] ss:$16 sps:$4 sm:$0xff]  }
  0xcc   :  { %1933 = vmatmul.mubr.bf16.vlgmr.msra.gmra.mrb[8].mxu1 %v4006_v12  ;;  %v89_v12 = vld [vmem:[#allocation2 + $0x38] sm:$0xff] }
  0xcd   :  { %1827 = vmatmul.mubr.bf16.vlgmr.msra.gmra.mrb[0].mxu0 %v4028_v36  ;;  %1954 = vmatpush1.bf16.msra.mxu1 %v3492_v35  ;;  %v4038_v61 = vpack.c.bf16 %v97_v58, %v89_v12  ;;  %v3572_v35 = vld [vmem:[#allocation5 + $0x3ac] ss:$16 sps:$4 sm:$0xff]  }
  0xce   :  { %1848 = vmatpush1.bf16.msra.mxu0 %v3489_v34  ;;  %1955 = vmatprep.subr.bf16.mxu1 %v3500_v38  ;;  %v3569_v34 = vld [vmem:[#allocation5 + $0x7a4] ss:$16 sps:$4 sm:$0xff]   ;;  %v3570_v38 = vld [vmem:[#allocation5 + $0x3a8] ss:$16 sps:$4 sm:$0xff]  }
  0xcf   :  { %1849 = vmatprep.subr.bf16.mxu0 %v3497_v37  ;;  %1836 = vmatprep.mubr.bf16.mxu0 %v4030_v45  ;;  %v3567_v37 = vld [vmem:[#allocation5 + $0x7a0] ss:$16 sps:$4 sm:$0xff]   ;;  %v105_v12 = vld [vmem:[#allocation2 + $0xb8] sm:$0xff] }
  0xd0   :  { %1942 = vmatprep.mubr.bf16.mxu1 %v4012_v40  ;;  %v3507_v40 = vld [vmem:[#allocation5 + $0x660] ss:$16 sps:$4 sm:$0xff]   ;;  %v113_v58 = vld [vmem:[#allocation2 + $0xf8] sm:$0xff] }
  0xd1   :  { %1956 = vmatpush1.bf16.msra.mxu1 %v3498_v44  ;;  %v3576_v44 = vld [vmem:[#allocation5 + $0x3c8] ss:$16 sps:$4 sm:$0xff]  }
  0xd2   :  { %1850 = vmatpush1.bf16.msra.mxu0 %v3495_v43  ;;  %1957 = vmatprep.subr.bf16.mxu1 %v3506_v51  ;;  %v3573_v43 = vld [vmem:[#allocation5 + $0x7c0] ss:$16 sps:$4 sm:$0xff]   ;;  %v3582_v51 = vld [vmem:[#allocation5 + $0x3e8] ss:$16 sps:$4 sm:$0xff]  }
  0xd3   :  { %1851 = vmatprep.subr.bf16.mxu0 %v3503_v47  ;;  %v3581_v47 = vld [vmem:[#allocation5 + $0x7e4] ss:$16 sps:$4 sm:$0xff]  }
  0xd4   :  { %1943 = vmatmul.mubr.bf16.gmra.mrb[12].mxu1 %v4014_v41  ;;  %v3524_v41 = vld [vmem:[#allocation5 + $0x2ac] ss:$16 sps:$4 sm:$0xff]  }
  0xd5   :  { %1837 = vmatmul.mubr.bf16.gmra.mrb[4].mxu0 %v4036_v56  ;;  %1958 = vmatpush1.bf16.msra.mxu1 %v3504_v54  ;;  %v96_v54 = vld [vmem:[#allocation2 + $0x70] sm:$0xff] }
  0xd6   :  { %1852 = vmatpush1.bf16.msra.mxu0 %v3501_v52  ;;  %1959 = vmatprep.subr.bf16.mxu1 %v3512_v59  ;;  %v88_v52 = vld [vmem:[#allocation2 + $0x30] sm:$0xff]  ;;  %v3585_v59 = vld [vmem:[#allocation5 + $0x408] ss:$16 sps:$4 sm:$0xff]  }
  0xd7   :  { %1853 = vmatprep.subr.bf16.mxu0 %v3509_v57  ;;  %1879 = vmatprep.mubr.bf16.mxu0 %v4038_v61  ;;  %v3587_v57 = vld [vmem:[#allocation5 + $0x40c] ss:$16 sps:$4 sm:$0xff]  }
  0xd8   :  { %1985 = vmatprep.mubr.bf16.mxu1 %v4002_v55  ;;  %v3533_v55 = vld [vmem:[#allocation5 + $0x6e4] ss:$16 sps:$4 sm:$0xff]  }
  0xd9   :  { %1960 = vmatpush1.bf16.msra.mxu1 %v3510_v62  ;;  %v3590_v62 = vld [vmem:[#allocation5 + $0x42c] ss:$16 sps:$4 sm:$0xff]  }
  0xda   :  { %1854 = vmatpush1.bf16.msra.mxu0 %v3507_v40  ;;  %1961 = vmatprep.subr.bf16.mxu1 %v3518_v0  ;;  %v4044_v40 = vpack.c.bf16 %v96_v54, %v88_v52  ;;  %v3588_v0 = vld [vmem:[#allocation5 + $0x428] ss:$16 sps:$4 sm:$0xff]   ;;  %v3629_v52 = vld [vmem:[#allocation5 + $0x5cc] ss:$16 sps:$4 sm:$0xff]  }
  0xdb   :  { %1855 = vmatprep.subr.bf16.mxu0 %v3515_v63  ;;  %v4046_v63 = vpack.c.bf16 %v113_v58, %v105_v12  ;;  %v3714_v54 = vld [vmem:[#allocation7 + $0xb0] ss:$8 sps:$4 sm:$0xff]   ;;  %v3632_v58 = vld [vmem:[#allocation5 + $0x5ec] ss:$16 sps:$4 sm:$0xff]  }
  0xdc   :  { %v3627_v12 = vld [vmem:[#allocation5 + $0x5c8] ss:$16 sps:$4 sm:$0xff]  }
  0xdd   :  { %1962 = vmatpush1.bf16.msra.mxu1 %v3516_v50  ;;  %v112_v50 = vld [vmem:[#allocation2 + $0xf0] sm:$0xff] }
  0xde   :  { %1856 = vmatpush1.bf16.msra.mxu0 %v3513_v1  ;;  %1963 = vmatprep.subr.bf16.mxu1 %v3524_v41  ;;  %v104_v1 = vld [vmem:[#allocation2 + $0xb0] sm:$0xff]  ;;  %v3591_v41 = vld [vmem:[#allocation5 + $0x448] ss:$16 sps:$4 sm:$0xff]  }
  0xdf   :  { %1857 = vmatprep.subr.bf16.mxu0 %v3521_v2  ;;  %v3593_v2 = vld [vmem:[#allocation5 + $0x44c] ss:$16 sps:$4 sm:$0xff]  }
  0xe1   :  { %1964 = vmatpush1.bf16.msra.mxu1 %v3522_v4  ;;  %v3596_v4 = vld [vmem:[#allocation5 + $0x46c] ss:$16 sps:$4 sm:$0xff]  }
  0xe2   :  { %1858 = vmatpush1.bf16.msra.mxu0 %v3519_v3  ;;  %1965 = vmatprep.subr.bf16.mxu1 %v3530_v6  ;;  %v4052_v3 = vpack.c.bf16 %v112_v50, %v104_v1  ;;  %v3683_v6 = vld [vmem:[#allocation7 + $0x4] ss:$8 sps:$4 sm:$0xff]   ;;  %v3720_v50 = vld [vmem:[#allocation7 + $0xd0] ss:$8 sps:$4 sm:$0xff]  }
  0xe3   :  { %1859 = vmatprep.subr.bf16.mxu0 %v3527_v5  ;;  %v3681_v5 = vld [vmem:[#allocation7] ss:$8 sps:$4 sm:$0xff]   ;;  %v3635_v1 = vld [vmem:[#allocation5 + $0x60c] ss:$16 sps:$4 sm:$0xff]  }
  0xe5   :  { %1966 = vmatpush1.bf16.msra.mxu1 %v3528_v8  ;;  %v3599_v8 = vld [vmem:[#allocation5 + $0x48c] ss:$16 sps:$4 sm:$0xff]  }
  0xe6   :  { %1860 = vmatpush1.bf16.msra.mxu0 %v3525_v7  ;;  %1967 = vmatprep.subr.bf16.mxu1 %v3536_v9  ;;  %v3686_v7 = vld [vmem:[#allocation7 + $0x14] ss:$8 sps:$4 sm:$0xff]   ;;  %v3597_v9 = vld [vmem:[#allocation5 + $0x488] ss:$16 sps:$4 sm:$0xff]  }
  0xe7   :  { %1861 = vmatprep.subr.bf16.mxu0 %v3533_v55  ;;  %v3689_v55 = vld [vmem:[#allocation7 + $0x24] ss:$8 sps:$4 sm:$0xff]  }
  0xe9   :  { %1968 = vmatpush1.bf16.msra.mxu1 %v3534_v11  ;;  %v3692_v11 = vld [vmem:[#allocation7 + $0x34] ss:$8 sps:$4 sm:$0xff]  }
  0xea   :  { %1862 = vmatpush1.bf16.msra.mxu0 %v3531_v10  ;;  %1969 = vmatprep.subr.bf16.mxu1 %v3542_v14  ;;  %v3602_v10 = vld [vmem:[#allocation5 + $0x4ac] ss:$16 sps:$4 sm:$0xff]   ;;  %v3690_v14 = vld [vmem:[#allocation7 + $0x30] ss:$8 sps:$4 sm:$0xff]  }
  0xeb   :  { %1863 = vmatprep.subr.bf16.mxu0 %v3539_v13  ;;  %v3600_v13 = vld [vmem:[#allocation5 + $0x4a8] ss:$16 sps:$4 sm:$0xff]  }
  0xed   :  { %1970 = vmatpush1.bf16.msra.mxu1 %v3540_v17  ;;  %v3603_v17 = vld [vmem:[#allocation5 + $0x4c8] ss:$16 sps:$4 sm:$0xff]  }
  0xee   :  { %1864 = vmatpush1.bf16.msra.mxu0 %v3537_v16  ;;  %1971 = vmatprep.subr.bf16.mxu1 %v3548_v19  ;;  %v3695_v16 = vld [vmem:[#allocation7 + $0x44] ss:$8 sps:$4 sm:$0xff]   ;;  %v3693_v19 = vld [vmem:[#allocation7 + $0x40] ss:$8 sps:$4 sm:$0xff]  }
  0xef   :  { %1865 = vmatprep.subr.bf16.mxu0 %v3545_v18  ;;  %v3608_v18 = vld [vmem:[#allocation5 + $0x4ec] ss:$16 sps:$4 sm:$0xff]  }
  0xf1   :  { %1972 = vmatpush1.bf16.msra.mxu1 %v3546_v21  ;;  %v3606_v21 = vld [vmem:[#allocation5 + $0x4e8] ss:$16 sps:$4 sm:$0xff]  }
  0xf2   :  { %1866 = vmatpush1.bf16.msra.mxu0 %v3543_v20  ;;  %1973 = vmatprep.subr.bf16.mxu1 %v3554_v23  ;;  %v3698_v20 = vld [vmem:[#allocation7 + $0x54] ss:$8 sps:$4 sm:$0xff]   ;;  %v3696_v23 = vld [vmem:[#allocation7 + $0x50] ss:$8 sps:$4 sm:$0xff]  }
  0xf3   :  { %1867 = vmatprep.subr.bf16.mxu0 %v3551_v22  ;;  %v3611_v22 = vld [vmem:[#allocation5 + $0x50c] ss:$16 sps:$4 sm:$0xff]  }
  0xf5   :  { %1974 = vmatpush1.bf16.msra.mxu1 %v3552_v25  ;;  %v3609_v25 = vld [vmem:[#allocation5 + $0x508] ss:$16 sps:$4 sm:$0xff]  }
  0xf6   :  { %1868 = vmatpush1.bf16.msra.mxu0 %v3549_v24  ;;  %1975 = vmatprep.subr.bf16.mxu1 %v3560_v27  ;;  %v3701_v24 = vld [vmem:[#allocation7 + $0x64] ss:$8 sps:$4 sm:$0xff]   ;;  %v3699_v27 = vld [vmem:[#allocation7 + $0x60] ss:$8 sps:$4 sm:$0xff]  }
  0xf7   :  { %1869 = vmatprep.subr.bf16.mxu0 %v3557_v26  ;;  %v3614_v26 = vld [vmem:[#allocation5 + $0x52c] ss:$16 sps:$4 sm:$0xff]  }
  0xf9   :  { %1976 = vmatpush1.bf16.msra.mxu1 %v3558_v29  ;;  %v3612_v29 = vld [vmem:[#allocation5 + $0x528] ss:$16 sps:$4 sm:$0xff]  }
  0xfa   :  { %1870 = vmatpush1.bf16.msra.mxu0 %v3555_v28  ;;  %1977 = vmatprep.subr.bf16.mxu1 %v3566_v31  ;;  %v3704_v28 = vld [vmem:[#allocation7 + $0x74] ss:$8 sps:$4 sm:$0xff]   ;;  %v3702_v31 = vld [vmem:[#allocation7 + $0x70] ss:$8 sps:$4 sm:$0xff]  }
  0xfb   :  { %1871 = vmatprep.subr.bf16.mxu0 %v3563_v30  ;;  %v3617_v30 = vld [vmem:[#allocation5 + $0x54c] ss:$16 sps:$4 sm:$0xff]  }
  0xfd   :  { %1978 = vmatpush1.bf16.msra.mxu1 %v3564_v33  ;;  %v3615_v33 = vld [vmem:[#allocation5 + $0x548] ss:$16 sps:$4 sm:$0xff]  }
  0xfe   :  { %1872 = vmatpush1.bf16.msra.mxu0 %v3561_v32  ;;  %1979 = vmatprep.subr.bf16.mxu1 %v3572_v35  ;;  %v3707_v32 = vld [vmem:[#allocation7 + $0x84] ss:$8 sps:$4 sm:$0xff]   ;;  %v3705_v35 = vld [vmem:[#allocation7 + $0x80] ss:$8 sps:$4 sm:$0xff]  }
  0xff   :  { %1873 = vmatprep.subr.bf16.mxu0 %v3569_v34  ;;  %v3620_v34 = vld [vmem:[#allocation5 + $0x56c] ss:$16 sps:$4 sm:$0xff]  }
 0x101   :  { %1980 = vmatpush1.bf16.msra.mxu1 %v3570_v38  ;;  %v3618_v38 = vld [vmem:[#allocation5 + $0x568] ss:$16 sps:$4 sm:$0xff]  }
 0x102   :  { %1874 = vmatpush1.bf16.msra.mxu0 %v3567_v37  ;;  %1981 = vmatprep.subr.bf16.mxu1 %v3578_v42  ;;  %v3710_v37 = vld [vmem:[#allocation7 + $0x94] ss:$8 sps:$4 sm:$0xff]   ;;  %v3708_v42 = vld [vmem:[#allocation7 + $0x90] ss:$8 sps:$4 sm:$0xff]  }
 0x103   :  { %1875 = vmatprep.subr.bf16.mxu0 %v3575_v39  ;;  %v3623_v39 = vld [vmem:[#allocation5 + $0x58c] ss:$16 sps:$4 sm:$0xff]  }
 0x105   :  { %1982 = vmatpush1.bf16.msra.mxu1 %v3576_v44  ;;  %v3621_v44 = vld [vmem:[#allocation5 + $0x588] ss:$16 sps:$4 sm:$0xff]  }
 0x106   :  { %1876 = vmatpush1.bf16.msra.mxu0 %v3573_v43  ;;  %1983 = vmatprep.subr.bf16.mxu1 %v3584_v48  ;;  %v3713_v43 = vld [vmem:[#allocation7 + $0xa4] ss:$8 sps:$4 sm:$0xff]   ;;  %v3711_v48 = vld [vmem:[#allocation7 + $0xa0] ss:$8 sps:$4 sm:$0xff]  }
 0x107   :  { %1877 = vmatprep.subr.bf16.mxu0 %v3581_v47  ;;  %v3626_v47 = vld [vmem:[#allocation5 + $0x5ac] ss:$16 sps:$4 sm:$0xff]  }
 0x109   :  { %1984 = vmatpush1.bf16.msra.mxu1 %v3582_v51  ;;  %v3624_v51 = vld [vmem:[#allocation5 + $0x5a8] ss:$16 sps:$4 sm:$0xff]  }
 0x10a   :  { %1878 = vmatpush1.bf16.msra.mxu0 %v3579_v49  ;;  %2006 = vmatprep.subr.bf16.mxu1 %v3587_v57  ;;  %v3716_v49 = vld [vmem:[#allocation7 + $0xb4] ss:$8 sps:$4 sm:$0xff]   ;;  %v3719_v57 = vld [vmem:[#allocation7 + $0xc4] ss:$8 sps:$4 sm:$0xff]  }
 0x10b   :  { %2532 = vmatprep.subr.bf16.mxu0 %v3683_v6  ;;  %v3639_v6 = vld [vmem:[#allocation5 + $0x648] ss:$16 sps:$4 sm:$0xff]  }
 0x10c   :  { %1986 = vmatmul.mubr.bf16.vlgmr.msra.gmra.mrb[8].mxu1 %v4008_v15  ;;  %v3594_v15 = vld [vmem:[#allocation5 + $0x468] ss:$16 sps:$4 sm:$0xff]  }
 0x10d   :  { %1880 = vmatmul.mubr.bf16.vlgmr.msra.gmra.mrb[0].mxu0 %v4044_v40  ;;  %2007 = vmatpush1.bf16.msra.mxu1 %v3585_v59  ;;  %v3717_v59 = vld [vmem:[#allocation7 + $0xc0] ss:$8 sps:$4 sm:$0xff]  }
 0x10e   :  { %1889 = vmatprep.mubr.bf16.mxu0 %v4046_v63  ;;  %2008 = vmatprep.subr.bf16.mxu1 %v3590_v62  ;;  %v3722_v62 = vld [vmem:[#allocation7 + $0xd4] ss:$8 sps:$4 sm:$0xff]  }
 0x10f   :  { %1995 = vmatprep.mubr.bf16.mxu1 %v4016_v46  ;;  %2533 = vmatpush1.bf16.msra.mxu0 %v3681_v5  ;;  %v3684_v46 = vld [vmem:[#allocation7 + $0x10] ss:$8 sps:$4 sm:$0xff]   ;;  %v3641_v5 = vld [vmem:[#allocation5 + $0x64c] ss:$16 sps:$4 sm:$0xff]  }
 0x110   :  { %2534 = vmatprep.subr.bf16.mxu0 %v3686_v7  ;;  %v3642_v7 = vld [vmem:[#allocation5 + $0x668] ss:$16 sps:$4 sm:$0xff]  }
 0x111   :  { %2009 = vmatpush1.bf16.msra.mxu1 %v3588_v0  ;;  %v3630_v0 = vld [vmem:[#allocation5 + $0x5e8] ss:$16 sps:$4 sm:$0xff]  }
 0x112   :  { %2010 = vmatprep.subr.bf16.mxu1 %v3593_v2  ;;  %v3633_v2 = vld [vmem:[#allocation5 + $0x608] ss:$16 sps:$4 sm:$0xff]  }
 0x113   :  { %2535 = vmatpush1.bf16.msra.mxu0 %v3684_v46  ;;  %v3650_v46 = vld [vmem:[#allocation5 + $0x6ac] ss:$16 sps:$4 sm:$0xff]  }
 0x114   :  { %1996 = vmatmul.mubr.bf16.gmra.mrb[12].mxu1 %v4021_v53  ;;  %v3687_v53 = vld [vmem:[#allocation7 + $0x20] ss:$8 sps:$4 sm:$0xff]   ;;  %2536 = vmatprep.subr.bf16.mxu0 %v3689_v55  ;;  %v3653_v55 = vld [vmem:[#allocation5 + $0x6cc] ss:$16 sps:$4 sm:$0xff]  }
 0x115   :  { %1890 = vmatmul.mubr.bf16.gmra.mrb[4].mxu0 %v4052_v3  ;;  %2011 = vmatpush1.bf16.msra.mxu1 %v3591_v41  ;;  %v3638_v41 = vld [vmem:[#allocation5 + $0x62c] ss:$16 sps:$4 sm:$0xff]  }
 0x116   :  { %2038 = vmatprep.mubr.bf16.mxu1 %v4025_v60  ;;  %2012 = vmatprep.subr.bf16.mxu1 %v3596_v4  ;;  %v3605_v60 = vld [vmem:[#allocation5 + $0x4cc] ss:$16 sps:$4 sm:$0xff]   ;;  %v3636_v4 = vld [vmem:[#allocation5 + $0x628] ss:$16 sps:$4 sm:$0xff]  }
 0x117   :  { %2537 = vmatpush1.bf16.msra.mxu0 %v3687_v53  ;;  %v3725_v53 = vld [vmem:[#allocation7 + $0xe4] ss:$8 sps:$4 sm:$0xff]  }
 0x118   :  { %2538 = vmatprep.subr.bf16.mxu0 %v3692_v11  ;;  %v3651_v11 = vld [vmem:[#allocation5 + $0x6c8] ss:$16 sps:$4 sm:$0xff]  }
 0x119   :  { %2013 = vmatpush1.bf16.msra.mxu1 %v3594_v15  ;;  %v3644_v15 = vld [vmem:[#allocation5 + $0x66c] ss:$16 sps:$4 sm:$0xff]  }
 0x11a   :  { %2014 = vmatprep.subr.bf16.mxu1 %v3599_v8  ;;  %v3647_v8 = vld [vmem:[#allocation5 + $0x68c] ss:$16 sps:$4 sm:$0xff]  }
 0x11b   :  { %2539 = vmatpush1.bf16.msra.mxu0 %v3690_v14  ;;  %v3728_v14 = vld [vmem:[#allocation7 + $0xf4] ss:$8 sps:$4 sm:$0xff]  }
 0x11c   :  { %2540 = vmatprep.subr.bf16.mxu0 %v3695_v16  ;;  %v3654_v16 = vld [vmem:[#allocation5 + $0x6e8] ss:$16 sps:$4 sm:$0xff]  }
 0x11d   :  { %2015 = vmatpush1.bf16.msra.mxu1 %v3597_v9 }
 0x11e   :  { %2016 = vmatprep.subr.bf16.mxu1 %v3602_v10 }
 0x11f   :  { %2541 = vmatpush1.bf16.msra.mxu0 %v3693_v19  ;;  %v3657_v19 = vld [vmem:[#allocation5 + $0x708] ss:$16 sps:$4 sm:$0xff]  }
 0x120   :  { %2542 = vmatprep.subr.bf16.mxu0 %v3698_v20  ;;  %v3662_v20 = vld [vmem:[#allocation5 + $0x72c] ss:$16 sps:$4 sm:$0xff]  }
 0x121   :  { %2017 = vmatpush1.bf16.msra.mxu1 %v3600_v13 }
 0x122   :  { %2018 = vmatprep.subr.bf16.mxu1 %v3605_v60  ;;  %v3656_v60 = vld [vmem:[#allocation5 + $0x6ec] ss:$16 sps:$4 sm:$0xff]  }
 0x123   :  { %2543 = vmatpush1.bf16.msra.mxu0 %v3696_v23  ;;  %v3663_v23 = vld [vmem:[#allocation5 + $0x748] ss:$16 sps:$4 sm:$0xff]  }
 0x124   :  { %2544 = vmatprep.subr.bf16.mxu0 %v3701_v24  ;;  %v3668_v24 = vld [vmem:[#allocation5 + $0x76c] ss:$16 sps:$4 sm:$0xff]  }
 0x125   :  { %2019 = vmatpush1.bf16.msra.mxu1 %v3603_v17  ;;  %v3726_v17 = vld [vmem:[#allocation7 + $0xf0] ss:$8 sps:$4 sm:$0xff]  }
 0x126   :  { %2020 = vmatprep.subr.bf16.mxu1 %v3608_v18  ;;  %v3659_v18 = vld [vmem:[#allocation5 + $0x70c] ss:$16 sps:$4 sm:$0xff]  }
 0x127   :  { %2545 = vmatpush1.bf16.msra.mxu0 %v3699_v27 }
 0x128   :  { %2546 = vmatprep.subr.bf16.mxu0 %v3704_v28  ;;  %v3666_v28 = vld [vmem:[#allocation5 + $0x768] ss:$16 sps:$4 sm:$0xff]  }
 0x129   :  { %2021 = vmatpush1.bf16.msra.mxu1 %v3606_v21  ;;  %v3660_v21 = vld [vmem:[#allocation5 + $0x728] ss:$16 sps:$4 sm:$0xff]  }
 0x12a   :  { %2022 = vmatprep.subr.bf16.mxu1 %v3611_v22  ;;  %v3665_v22 = vld [vmem:[#allocation5 + $0x74c] ss:$16 sps:$4 sm:$0xff]  }
 0x12b   :  { %2547 = vmatpush1.bf16.msra.mxu0 %v3702_v31 }
 0x12c   :  { %2548 = vmatprep.subr.bf16.mxu0 %v3707_v32  ;;  %v3669_v32 = vld [vmem:[#allocation5 + $0x788] ss:$16 sps:$4 sm:$0xff]  }
 0x12d   :  { %2023 = vmatpush1.bf16.msra.mxu1 %v3609_v25  ;;  %v3731_v25 = vld [vmem:[#allocation7 + $0x104] ss:$8 sps:$4 sm:$0xff]  }
 0x12e   :  { %2024 = vmatprep.subr.bf16.mxu1 %v3614_v26 }
 0x12f   :  { %2549 = vmatpush1.bf16.msra.mxu0 %v3705_v35  ;;  %v3677_v35 = vld [vmem:[#allocation5 + $0x7cc] ss:$16 sps:$4 sm:$0xff]  }
 0x130   :  { %2550 = vmatprep.subr.bf16.mxu0 %v3710_v37  ;;  %v3675_v37 = vld [vmem:[#allocation5 + $0x7c8] ss:$16 sps:$4 sm:$0xff]  }
 0x131   :  { %2025 = vmatpush1.bf16.msra.mxu1 %v3612_v29 }
 0x132   :  { %2026 = vmatprep.subr.bf16.mxu1 %v3617_v30  ;;  %v3671_v30 = vld [vmem:[#allocation5 + $0x78c] ss:$16 sps:$4 sm:$0xff]  }
 0x133   :  { %2551 = vmatpush1.bf16.msra.mxu0 %v3708_v42  ;;  %v388_v42 = vlaneseq }
 0x134   :  { %2552 = vmatprep.subr.bf16.mxu0 %v3713_v43 }
 0x135   :  { %2027 = vmatpush1.bf16.msra.mxu1 %v3615_v33  ;;  %v3674_v33 = vld [vmem:[#allocation5 + $0x7ac] ss:$16 sps:$4 sm:$0xff]   ;;  %v4072_v43 = vshrl.u32 %v388_v42, 7  ;;  %v3741_v42 = vld [vmem:[#allocation7 + $0x140] ss:$8 sps:$4 sm:$0xff]  }
 0x136   :  { %2028 = vmatprep.subr.bf16.mxu1 %v3620_v34  ;;  %v3672_v34 = vld [vmem:[#allocation5 + $0x7a8] ss:$16 sps:$4 sm:$0xff]  }
 0x137   :  { %2553 = vmatpush1.bf16.msra.mxu0 %v3711_v48  ;;  %v394_v48 = vsub.s32 1, %v4072_v43 }
 0x138   :  { %2554 = vmatprep.subr.bf16.mxu0 %v3716_v49 }
 0x139   :  { %2029 = vmatpush1.bf16.msra.mxu1 %v3618_v38  ;;  %v3680_v38 = vld [vmem:[#allocation5 + $0x7ec] ss:$16 sps:$4 sm:$0xff]  }
 0x13a   :  { %2030 = vmatprep.subr.bf16.mxu1 %v3623_v39  ;;  %v3678_v39 = vld [vmem:[#allocation5 + $0x7e8] ss:$16 sps:$4 sm:$0xff]  }
 0x13b   :  { %2555 = vmatpush1.bf16.msra.mxu0 %v3714_v54 }
 0x13c   :  { %2556 = vmatprep.subr.bf16.mxu0 %v3719_v57 }
 0x13d   :  { %2031 = vmatpush1.bf16.msra.mxu1 %v3621_v44  ;;  %v390_v44 = vsub.s32 0, %v4072_v43 }
 0x13e   :  { %2032 = vmatprep.subr.bf16.mxu1 %v3626_v47  ;;  %v4078_v47 = vld [vmem:[%s4174_s2] sm:$0xf] }
 0x13f   :  { %2557 = vmatpush1.bf16.msra.mxu0 %v3717_v59 }
 0x140   :  { %2558 = vmatprep.subr.bf16.mxu0 %v3722_v62 }
 0x141   :  { %2033 = vmatpush1.bf16.msra.mxu1 %v3624_v51 }
 0x142   :  { %2034 = vmatprep.subr.bf16.mxu1 %v3629_v52 }
 0x143   :  { %2559 = vmatpush1.bf16.msra.mxu0 %v3720_v50 }
 0x144   :  { %2560 = vmatprep.subr.bf16.mxu0 %v3725_v53 }
 0x145   :  { %2035 = vmatpush1.bf16.msra.mxu1 %v3627_v12 }
 0x146   :  { %2036 = vmatprep.subr.bf16.mxu1 %v3632_v58 }
 0x149   :  { %2037 = vmatpush1.bf16.msra.mxu1 %v3630_v0 }
 0x14a   :  { %2059 = vmatprep.subr.bf16.mxu1 %v3635_v1 }
 0x14c   :  { %2039 = vmatmul.mubr.bf16.vlgmr.msra.gmra.mrb[8].mxu1 %v4028_v36  ;;  %v3645_v36 = vld [vmem:[#allocation5 + $0x688] ss:$16 sps:$4 sm:$0xff]  }
 0x14d   :  { %2060 = vmatpush1.bf16.msra.mxu1 %v3633_v2  ;;  %2048 = vmatprep.mubr.bf16.mxu1 %v4030_v45  ;;  %v3648_v45 = vld [vmem:[#allocation5 + $0x6a8] ss:$16 sps:$4 sm:$0xff]  }
 0x14e   :  { %2061 = vmatprep.subr.bf16.mxu1 %v3638_v41 }
 0x151   :  { %2062 = vmatpush1.bf16.msra.mxu1 %v3636_v4 }
 0x152   :  { %2063 = vmatprep.subr.bf16.mxu1 %v3641_v5 }
 0x154   :  { %2049 = vmatmul.mubr.bf16.gmra.mrb[12].mxu1 %v4036_v56 }
 0x155   :  { %2064 = vmatpush1.bf16.msra.mxu1 %v3639_v6  ;;  %2091 = vmatprep.mubr.bf16.mxu1 %v4038_v61  ;;  %v3723_v61 = vld [vmem:[#allocation7 + $0xe0] ss:$8 sps:$4 sm:$0xff]  }
 0x156   :  { %2065 = vmatprep.subr.bf16.mxu1 %v3644_v15  ;;  %2561 = vmatpush1.bf16.msra.mxu0 %v3723_v61 }
 0x157   :  { %2562 = vmatprep.subr.bf16.mxu0 %v3728_v14 }
 0x159   :  { %2066 = vmatpush1.bf16.msra.mxu1 %v3642_v7 }
 0x15a   :  { %2067 = vmatprep.subr.bf16.mxu1 %v3647_v8  ;;  %2563 = vmatpush1.bf16.msra.mxu0 %v3726_v17  ;;  %v3737_v17 = vld [vmem:[#allocation7 + $0x124] ss:$8 sps:$4 sm:$0xff]  }
 0x15b   :  { %2585 = vmatprep.subr.bf16.mxu0 %v3731_v25  ;;  %v2662_v25 = vld [vmem:[#allocation8 + $0x80] sm:$0xff] }
 0x15d   :  { %2068 = vmatpush1.bf16.msra.mxu1 %v3645_v36  ;;  %v3729_v36 = vld [vmem:[#allocation7 + $0x100] ss:$8 sps:$4 sm:$0xff]  }
 0x15e   :  { %2069 = vmatprep.subr.bf16.mxu1 %v3650_v46 }
 0x15f   :  { %v4061_v9 = vpop.f32.mrb[0].mxu1 }
 0x160   :  { %v4063_v10 = vpop.f32.mrb[1].mxu1 }
 0x161   :  { %v4065_v56 = vpop.f32.mrb[2].mxu1  ;;  %2070 = vmatpush1.bf16.msra.mxu1 %v3648_v45 }
 0x162   :  { %v4067_v13 = vpop.f32.mrb[3].mxu1  ;;  %2071 = vmatprep.subr.bf16.mxu1 %v3653_v55 }
 0x165   :  { %2072 = vmatpush1.bf16.msra.mxu1 %v3651_v11 }
 0x166   :  { %2073 = vmatprep.subr.bf16.mxu1 %v3656_v60  ;;  %v3732_v60 = vld [vmem:[#allocation7 + $0x110] ss:$8 sps:$4 sm:$0xff]  }
 0x167   :  { %v1732_v26 = vpop.f32.mrb[4].mxu1 }
 0x168   :  { %v1734_v27 = vpop.f32.mrb[5].mxu1 }
 0x169   :  { %2074 = vmatpush1.bf16.msra.mxu1 %v3654_v16  ;;  %v1736_v29 = vpop.f32.mrb[6].mxu1 }
 0x16a   :  { %2075 = vmatprep.subr.bf16.mxu1 %v3659_v18  ;;  %v1738_v31 = vpop.f32.mrb[7].mxu1 }
 0x16d   :  { %2076 = vmatpush1.bf16.msra.mxu1 %v3657_v19 }
 0x16e   :  { %2077 = vmatprep.subr.bf16.mxu1 %v3662_v20 }
 0x171   :  { %2078 = vmatpush1.bf16.msra.mxu1 %v3660_v21 }
 0x172   :  { %2079 = vmatprep.subr.bf16.mxu1 %v3665_v22  ;;  %v3735_v22 = vld [vmem:[#allocation7 + $0x120] ss:$8 sps:$4 sm:$0xff]  }
 0x175   :  { %2080 = vmatpush1.bf16.msra.mxu1 %v3663_v23  ;;  %v3740_v23 = vld [vmem:[#allocation7 + $0x134] ss:$8 sps:$4 sm:$0xff]  }
 0x176   :  { %2081 = vmatprep.subr.bf16.mxu1 %v3668_v24  ;;  %v3738_v24 = vld [vmem:[#allocation7 + $0x130] ss:$8 sps:$4 sm:$0xff]  }
 0x179   :  { %2082 = vmatpush1.bf16.msra.mxu1 %v3666_v28 }
 0x17a   :  { %2083 = vmatprep.subr.bf16.mxu1 %v3671_v30  ;;  %v2664_v30 = vld [vmem:[#allocation8 + $0x90] sm:$0xff] }
 0x17d   :  { %2084 = vmatpush1.bf16.msra.mxu1 %v3669_v32  ;;  %v3743_v32 = vld [vmem:[#allocation7 + $0x144] ss:$8 sps:$4 sm:$0xff]  }
 0x17e   :  { %2085 = vmatprep.subr.bf16.mxu1 %v3674_v33 }
 0x181   :  { %2086 = vmatpush1.bf16.msra.mxu1 %v3672_v34 }
 0x182   :  { %2087 = vmatprep.subr.bf16.mxu1 %v3677_v35  ;;  %v2648_v35 = vld [vmem:[#allocation8 + $0x10] sm:$0xff] }
 0x185   :  { %2088 = vmatpush1.bf16.msra.mxu1 %v3675_v37  ;;  %v2649_v37 = vld [vmem:[#allocation8 + $0x18] sm:$0xff] }
 0x186   :  { %2089 = vmatprep.subr.bf16.mxu1 %v3680_v38  ;;  %v2666_v38 = vld [vmem:[#allocation8 + $0xa0] sm:$0xff] }
 0x189   :  { %2090 = vmatpush1.bf16.msra.mxu1 %v3678_v39  ;;  %v2667_v39 = vld [vmem:[#allocation8 + $0xa8] sm:$0xff] }
 0x18c   :  { %2092 = vmatmul.mubr.bf16.vlgmr.msra.gmra.mrb[8].mxu1 %v4044_v40  ;;  %v391_v40 = vrot.slane %v4078_v47, %v390_v44 }
 0x18d   :  { %2101 = vmatprep.mubr.bf16.mxu1 %v4046_v63  ;;  %v395_v63 = vrot.slane %v4078_v47, %v394_v48 }
 0x18e   :  { %v1727_v52 = vadd.f32 %v4065_v56, %v391_v40  ;;  %v1733_v5 = vadd.f32 %v1732_v26, %v391_v40  ;;  %v1737_v46 = vadd.f32 %v1736_v29, %v391_v40  ;;  %v2663_v26 = vld [vmem:[#allocation8 + $0x88] sm:$0xff] }
 0x18f   :  { %v1725_v49 = vadd.f32 %v4063_v10, %v395_v63  ;;  %v1729_v12 = vadd.f32 %v4067_v13, %v395_v63  ;;  %v1735_v15 = vadd.f32 %v1734_v27, %v395_v63  ;;  %v1739_v10 = vadd.f32 %v1738_v31, %v395_v63  ;;  %v2646_v27 = vld [vmem:[#allocation8] sm:$0xff]  ;;  %v2647_v29 = vld [vmem:[#allocation8 + $0x8] sm:$0xff]  ;;  %v2665_v31 = vld [vmem:[#allocation8 + $0x98] sm:$0xff] }
 0x190   :  { %v4091_v28 = vpack.c.bf16 %v2663_v26, %v2662_v25  ;;  %v4093_v33 = vpack.c.bf16 %v2647_v29, %v2646_v27  ;;  %v4095_v34 = vpack.c.bf16 %v2665_v31, %v2664_v30  ;;  %v4100_v63 = vpack.c.bf16 %v2649_v37, %v2648_v35  ;;  %v3771_v25 = vld [vmem:[#allocation7 + $0x1e0] ss:$8 sps:$4 sm:$0xff]   ;;  %v3776_v26 = vld [vmem:[#allocation7 + $0x1f4] ss:$8 sps:$4 sm:$0xff]   ;;  %v3774_v27 = vld [vmem:[#allocation7 + $0x1f0] ss:$8 sps:$4 sm:$0xff]  }
 0x191   :  { %v398_v29 = vsub.s32 2, %v4072_v43  ;;  %v402_v30 = vsub.s32 3, %v4072_v43 }
 0x192   :  { %3190 = vmatprep.subr.bf16.mxu1 %v4091_v28 }
 0x193   :  { %3198 = vmatpush3.bf16.msra.mxu1 %v4093_v33  ;;  %v399_v31 = vrot.slane %v4078_v47, %v398_v29 }
 0x194   :  { %2102 = vmatmul.mubr.bf16.gmra.mrb[12].mxu1 %v4052_v3  ;;  %v1723_v3 = vadd.f32 %v4061_v9, %v391_v40  ;;  %v3734_v9 = vld [vmem:[#allocation7 + $0x114] ss:$8 sps:$4 sm:$0xff]   ;;  %3191 = vmatprep.subr.bf16.mxu1 %v4095_v34 }
 0x195   :  { %v3746_v40 = vld [vmem:[#allocation7 + $0x154] ss:$8 sps:$4 sm:$0xff]  }
 0x197   :  { %3199 = vmatpush3.bf16.msra.mxu1 %v4100_v63 }
 0x1e0   :  { %v1881_v51 = vpop.f32.mrb[0].mxu0 }
 0x1e1   :  { %v3207_v54 = vadd.f32 %v1881_v51, %v1723_v3  ;;  %v1883_v57 = vpop.f32.mrb[1].mxu0  ;;  %v4102_v3 = vpack.c.bf16 %v2667_v39, %v2666_v38  ;;  %v2651_v51 = vld [vmem:[#allocation8 + $0x28] sm:$0xff] }
 0x1e2   :  { %v3209_v58 = vadd.f32 %v1883_v57, %v1725_v49  ;;  %v1885_v59 = vpop.f32.mrb[2].mxu0  ;;  %v2650_v49 = vld [vmem:[#allocation8 + $0x20] sm:$0xff]  ;;  %v3744_v57 = vld [vmem:[#allocation7 + $0x150] ss:$8 sps:$4 sm:$0xff]  }
 0x1e3   :  { %v3211_v62 = vadd.f32 %v1885_v59, %v1727_v52  ;;  %v1887_v0 = vpop.f32.mrb[3].mxu0  ;;  %v2112_v50 = vmax.f32 %v3207_v54, 0.0  ;;  %v2668_v52 = vld [vmem:[#allocation8 + $0xb0] sm:$0xff]  ;;  %v2669_v54 = vld [vmem:[#allocation8 + $0xb8] sm:$0xff]  ;;  %3192 = vmatprep.subr.bf16.mxu1 %v4102_v3 }
 0x1e4   :  { %v3213_v1 = vadd.f32 %v1887_v0, %v1729_v12  ;;  %v2113_v41 = vmax.f32 %v3209_v58, 0.0  ;;  %v3749_v12 = vld [vmem:[#allocation7 + $0x164] ss:$8 sps:$4 sm:$0xff]   ;;  %v4106_v58 = vpack.c.bf16 %v2651_v51, %v2650_v49  ;;  %v4108_v59 = vpack.c.bf16 %v2669_v54, %v2668_v52  ;;  %v2653_v0 = vld [vmem:[#allocation8 + $0x38] sm:$0xff] }
 0x1e5   :  { %v2116_v2 = vmax.f32 %v3211_v62, 0.0  ;;  %v2652_v62 = vld [vmem:[#allocation8 + $0x30] sm:$0xff] }
 0x1e6   :  { %v2117_v4 = vmax.f32 %v3213_v1, 0.0  ;;  %v2670_v1 = vld [vmem:[#allocation8 + $0xc0] sm:$0xff]  ;;  %3200 = vmatpush3.bf16.msra.mxu1 %v4106_v58 }
 0x1e7   :  { %v2128_v6 = vpack.c.bf16 %v2116_v2, %v2112_v50  ;;  %v2671_v50 = vld [vmem:[#allocation8 + $0xc8] sm:$0xff]  ;;  %3193 = vmatprep.subr.bf16.mxu1 %v4108_v59 }
 0x1e8   :  { %v2129_v7 = vpack.c.bf16 %v2117_v4, %v2113_v41  ;;  %v1891_v8 = vpop.f32.mrb[4].mxu0  ;;  %v3747_v2 = vld [vmem:[#allocation7 + $0x160] ss:$8 sps:$4 sm:$0xff]   ;;  %v3752_v41 = vld [vmem:[#allocation7 + $0x174] ss:$8 sps:$4 sm:$0xff]   ;;  %v4112_v4 = vpack.c.bf16 %v2653_v0, %v2652_v62 }
 0x1e9   :  { %v3215_v45 = vadd.f32 %v1891_v8, %v1733_v5  ;;  %v1893_v55 = vpop.f32.mrb[5].mxu0  ;;  %v4114_v5 = vpack.c.bf16 %v2671_v50, %v2670_v1  ;;  %v2673_v8 = vld [vmem:[#allocation8 + $0xd8] sm:$0xff] }
 0x1ea   :  { %v3217_v53 = vadd.f32 %v1893_v55, %v1735_v15  ;;  %v1895_v56 = vpop.f32.mrb[6].mxu0  ;;  %2564 = vmatprep.mubr.bf16.mxu0 %v2129_v7  ;;  %v2655_v15 = vld [vmem:[#allocation8 + $0x48] sm:$0xff]  ;;  %v2672_v7 = vld [vmem:[#allocation8 + $0xd0] sm:$0xff]  ;;  %3201 = vmatpush3.bf16.msra.mxu1 %v4112_v4 }
 0x1eb   :  { %v3219_v11 = vadd.f32 %v1895_v56, %v1737_v46  ;;  %v1897_v61 = vpop.f32.mrb[7].mxu0  ;;  %2565 = vmatmul.mubr.bf16.vlgmr.msra.gmra.mrb[8].mxu0 %v2128_v6  ;;  %v2120_v14 = vmax.f32 %v3215_v45, 0.0  ;;  %v2654_v6 = vld [vmem:[#allocation8 + $0x40] sm:$0xff]  ;;  %3194 = vmatprep.subr.bf16.mxu1 %v4114_v5  ;;  %v4120_v55 = vpack.c.bf16 %v2673_v8, %v2672_v7  ;;  %v2675_v56 = vld [vmem:[#allocation8 + $0xe8] sm:$0xff] }
 0x1ec   :  { %v3221_v13 = vadd.f32 %v1897_v61, %v1739_v10  ;;  %2586 = vmatpush1.bf16.msra.mxu0 %v3729_v36  ;;  %v2121_v18 = vmax.f32 %v3217_v53, 0.0  ;;  %v3750_v36 = vld [vmem:[#allocation7 + $0x170] ss:$8 sps:$4 sm:$0xff]   ;;  %v3755_v46 = vld [vmem:[#allocation7 + $0x184] ss:$8 sps:$4 sm:$0xff]   ;;  %v4118_v45 = vpack.c.bf16 %v2655_v15, %v2654_v6 }
 0x1ed   :  { %v2124_v16 = vmax.f32 %v3219_v11, 0.0  ;;  %2587 = vmatprep.subr.bf16.mxu0 %v3734_v9  ;;  %v2656_v9 = vld [vmem:[#allocation8 + $0x50] sm:$0xff]  ;;  %v2657_v10 = vld [vmem:[#allocation8 + $0x58] sm:$0xff]  ;;  %v2674_v53 = vld [vmem:[#allocation8 + $0xe0] sm:$0xff] }
 0x1ee   :  { %v2125_v19 = vmax.f32 %v3221_v13, 0.0  ;;  %3202 = vmatpush3.bf16.msra.mxu1 %v4118_v45  ;;  %v3753_v11 = vld [vmem:[#allocation7 + $0x180] ss:$8 sps:$4 sm:$0xff]   ;;  %v3758_v61 = vld [vmem:[#allocation7 + $0x194] ss:$8 sps:$4 sm:$0xff]   ;;  %v4124_v13 = vpack.c.bf16 %v2657_v10, %v2656_v9 }
 0x1ef   :  { %v2132_v20 = vpack.c.bf16 %v2124_v16, %v2120_v14  ;;  %3195 = vmatprep.subr.bf16.mxu1 %v4120_v55  ;;  %v3756_v14 = vld [vmem:[#allocation7 + $0x190] ss:$8 sps:$4 sm:$0xff]   ;;  %v3761_v16 = vld [vmem:[#allocation7 + $0x1a4] ss:$8 sps:$4 sm:$0xff]  }
 0x1f0   :  { %v2133_v21 = vpack.c.bf16 %v2125_v19, %v2121_v18  ;;  %2588 = vmatpush1.bf16.msra.mxu0 %v3732_v60  ;;  %v4126_v60 = vpack.c.bf16 %v2675_v56, %v2674_v53  ;;  %v3764_v18 = vld [vmem:[#allocation7 + $0x1b4] ss:$8 sps:$4 sm:$0xff]   ;;  %v3762_v19 = vld [vmem:[#allocation7 + $0x1b0] ss:$8 sps:$4 sm:$0xff]  }
 0x1f1   :  { %2589 = vmatprep.subr.bf16.mxu0 %v3737_v17  ;;  %v3759_v17 = vld [vmem:[#allocation7 + $0x1a0] ss:$8 sps:$4 sm:$0xff]   ;;  %v2660_v53 = vld [vmem:[#allocation8 + $0x70] sm:$0xff] }
 0x1f2   :  { %2574 = vmatprep.mubr.bf16.mxu0 %v2133_v21  ;;  %3203 = vmatpush3.bf16.msra.mxu1 %v4124_v13  ;;  %v3765_v21 = vld [vmem:[#allocation7 + $0x1c0] ss:$8 sps:$4 sm:$0xff]  }
 0x1f3   :  { %2575 = vmatmul.mubr.bf16.gmra.mrb[12].mxu0 %v2132_v20  ;;  %3196 = vmatprep.subr.bf16.mxu1 %v4126_v60  ;;  %v3767_v20 = vld [vmem:[#allocation7 + $0x1c4] ss:$8 sps:$4 sm:$0xff]  }
 0x1f4   :  { %2590 = vmatpush1.bf16.msra.mxu0 %v3735_v22  ;;  %v3770_v22 = vld [vmem:[#allocation7 + $0x1d4] ss:$8 sps:$4 sm:$0xff]  }
 0x1f5   :  { %2591 = vmatprep.subr.bf16.mxu0 %v3740_v23  ;;  %v3768_v23 = vld [vmem:[#allocation7 + $0x1d0] ss:$8 sps:$4 sm:$0xff]  }
 0x1f8   :  { %2592 = vmatpush1.bf16.msra.mxu0 %v3738_v24  ;;  %v3773_v24 = vld [vmem:[#allocation7 + $0x1e4] ss:$8 sps:$4 sm:$0xff]  }
 0x1f9   :  { %2593 = vmatprep.subr.bf16.mxu0 %v3743_v32  ;;  %v403_v32 = vrot.slane %v4078_v47, %v402_v30 }
 0x1fc   :  { %2594 = vmatpush1.bf16.msra.mxu0 %v3741_v42 }
 0x1fd   :  { %2595 = vmatprep.subr.bf16.mxu0 %v3746_v40 }
 0x200   :  { %2596 = vmatpush1.bf16.msra.mxu0 %v3744_v57 }
 0x201   :  { %2597 = vmatprep.subr.bf16.mxu0 %v3749_v12 }
 0x204   :  { %2598 = vmatpush1.bf16.msra.mxu0 %v3747_v2 }
 0x205   :  { %2599 = vmatprep.subr.bf16.mxu0 %v3752_v41 }
 0x208   :  { %2600 = vmatpush1.bf16.msra.mxu0 %v3750_v36 }
 0x209   :  { %2601 = vmatprep.subr.bf16.mxu0 %v3755_v46 }
 0x20c   :  { %2602 = vmatpush1.bf16.msra.mxu0 %v3753_v11 }
 0x20d   :  { %2603 = vmatprep.subr.bf16.mxu0 %v3758_v61 }
 0x210   :  { %2604 = vmatpush1.bf16.msra.mxu0 %v3756_v14 }
 0x211   :  { %2605 = vmatprep.subr.bf16.mxu0 %v3761_v16 }
 0x214   :  { %2606 = vmatpush1.bf16.msra.mxu0 %v3759_v17 }
 0x215   :  { %2607 = vmatprep.subr.bf16.mxu0 %v3764_v18 }
 0x218   :  { %2608 = vmatpush1.bf16.msra.mxu0 %v3762_v19 }
 0x219   :  { %2609 = vmatprep.subr.bf16.mxu0 %v3767_v20 }
 0x21c   :  { %2610 = vmatpush1.bf16.msra.mxu0 %v3765_v21 }
 0x21d   :  { %2611 = vmatprep.subr.bf16.mxu0 %v3770_v22 }
 0x220   :  { %2612 = vmatpush1.bf16.msra.mxu0 %v3768_v23 }
 0x221   :  { %2613 = vmatprep.subr.bf16.mxu0 %v3773_v24 }
 0x224   :  { %2614 = vmatpush1.bf16.msra.mxu0 %v3771_v25 }
 0x225   :  { %2615 = vmatprep.subr.bf16.mxu0 %v3776_v26 }
 0x228   :  { %2616 = vmatpush1.bf16.msra.mxu0 %v3774_v27 }
 0x229   :  { %3159 = vmatprep.subr.bf16.mxu0 %v4091_v28 }
 0x25f   :  { %v2093_v35 = vpop.f32.mrb[8].mxu1 }
 0x260   :  { %v3222_v37 = vadd.f32 %v2093_v35, %v399_v31  ;;  %v2095_v38 = vpop.f32.mrb[9].mxu1 }
 0x261   :  { %v3223_v39 = vadd.f32 %v2095_v38, %v403_v32  ;;  %v2097_v42 = vpop.f32.mrb[10].mxu1 }
 0x262   :  { %v3224_v40 = vadd.f32 %v2097_v42, %v399_v31  ;;  %v2099_v49 = vpop.f32.mrb[11].mxu1  ;;  %v2114_v52 = vmax.f32 %v3222_v37, 0.0  ;;  %v3113_v37 = vld [vmem:[%s4178_s6] ss:$0 sm:$0xff]  ;;  %s3865_s6 = scalar_lea.vmem %s2780_s9, 512 }
 0x263   :  { %v3225_v51 = vadd.f32 %v2099_v49, %v403_v32  ;;  %v2115_v57 = vmax.f32 %v3223_v39, 0.0  ;;  %p3866_p4 = scmp.ne.s32.totalorder %s2780_s9, %s3865_s6  ;;  %p3871_p6 = scmp.lt.s32.totalorder %s3865_s6, %s3865_s6 }
 0x264   :  { %v2118_v54 = vmax.f32 %v3224_v40, 0.0 }
 0x265   :  { %v2119_v28 = vmax.f32 %v3225_v51, 0.0  ;;  %p3872_p7 = por %p3871_p6, %p3870_p5 }
 0x266   :  { %v2130_v12 = vpack.c.bf16 %v2118_v54, %v2114_v52 }
 0x267   :  { %v2131_v62 = vpack.c.bf16 %v2119_v28, %v2115_v57  ;;  %v2103_v0 = vpop.f32.mrb[12].mxu1  ;;  %p3873_p8 = pnand %p3872_p7, %p3866_p4 }
 0x268   :  { %v3226_v1 = vadd.f32 %v2103_v0, %v399_v31  ;;  %v2105_v50 = vpop.f32.mrb[13].mxu1 }
 0x269   :  { %v3227_v2 = vadd.f32 %v2105_v50, %v403_v32  ;;  %v2107_v41 = vpop.f32.mrb[14].mxu1  ;;  %2617 = vmatprep.mubr.bf16.mxu0 %v2131_v62 }
 0x26a   :  { %v3228_v47 = vadd.f32 %v2107_v41, %v399_v31  ;;  %v2109_v6 = vpop.f32.mrb[15].mxu1  ;;  %2618 = vmatmul.mubr.bf16.vlgmr.msra.gmra.mrb[8].mxu0 %v2130_v12  ;;  %v2122_v7 = vmax.f32 %v3226_v1, 0.0 }
 0x26b   :  { %v3229_v15 = vadd.f32 %v2109_v6, %v403_v32  ;;  %3161 = vmatpush3.bf16.msra.mxu0 %v4093_v33  ;;  %v2123_v36 = vmax.f32 %v3227_v2, 0.0  ;;  %v2658_v33 = vld [vmem:[#allocation8 + $0x60] sm:$0xff] }
 0x26c   :  { %v2126_v8 = vmax.f32 %v3228_v47, 0.0  ;;  %3163 = vmatprep.subr.bf16.mxu0 %v4095_v34  ;;  %v2659_v34 = vld [vmem:[#allocation8 + $0x68] sm:$0xff] }
 0x26d   :  { %v2127_v46 = vmax.f32 %v3229_v15, 0.0 }
 0x26e   :  { %v2134_v9 = vpack.c.bf16 %v2126_v8, %v2122_v7 }
 0x26f   :  { %v2135_v10 = vpack.c.bf16 %v2127_v46, %v2123_v36  ;;  %3165 = vmatpush3.bf16.msra.mxu0 %v4100_v63  ;;  %v3184_v63 = vpack.c.bf16 %v2659_v34, %v2658_v33 }
 0x270   :  { %3167 = vmatprep.subr.bf16.mxu0 %v4102_v3  ;;  %v2676_v3 = vld [vmem:[#allocation8 + $0xf0] sm:$0xff] }
 0x271   :  { %2627 = vmatprep.mubr.bf16.mxu0 %v2135_v10  ;;  %3204 = vmatpush3.bf16.msra.mxu1 %v3184_v63 }
 0x272   :  { %2628 = vmatmul.mubr.bf16.gmra.mrb[12].mxu0 %v2134_v9 }
 0x273   :  { %3169 = vmatpush3.bf16.msra.mxu0 %v4106_v58  ;;  %v2677_v58 = vld [vmem:[#allocation8 + $0xf8] sm:$0xff] }
 0x274   :  { %3171 = vmatprep.subr.bf16.mxu0 %v4108_v59  ;;  %v3186_v59 = vpack.c.bf16 %v2677_v58, %v2676_v3 }
 0x276   :  { %3197 = vmatprep.subr.bf16.mxu1 %v3186_v59 }
 0x277   :  { %3173 = vmatpush3.bf16.msra.mxu0 %v4112_v4  ;;  %v2661_v4 = vld [vmem:[#allocation8 + $0x78] sm:$0xff] }
 0x278   :  { %3175 = vmatprep.subr.bf16.mxu0 %v4114_v5  ;;  %v3188_v56 = vpack.c.bf16 %v2661_v4, %v2660_v53  ;;  %v2200_v5 = vld [vmem:[%s4176_s4] sm:$0x3] }
 0x27a   :  { %3205 = vmatpush3.bf16.msra.mxu1 %v3188_v56 }
 0x27b   :  { %3177 = vmatpush3.bf16.msra.mxu0 %v4118_v45  ;;  %v2205_v45 = vrot.slane %v2200_v5, %v390_v44 }
 0x27c   :  { %3179 = vmatprep.subr.bf16.mxu0 %v4120_v55  ;;  %v2209_v55 = vrot.slane %v2200_v5, %v394_v48 }
 0x27f   :  { %3181 = vmatpush3.bf16.msra.mxu0 %v4124_v13 }
 0x280   :  { %3183 = vmatprep.subr.bf16.mxu0 %v4126_v60 }
 0x283   :  { %3185 = vmatpush3.bf16.msra.mxu0 %v3184_v63 }
 0x284   :  { %3187 = vmatprep.subr.bf16.mxu0 %v3186_v59 }
 0x287   :  { %3189 = vmatpush3.bf16.msra.mxu0 %v3188_v56 }
 0x33d   :  { %v2619_v11 = vpop.f32.mrb[8].mxu0 }
 0x33e   :  { %v3230_v61 = vadd.f32 %v2619_v11, %v2205_v45  ;;  %v2621_v13 = vpop.f32.mrb[9].mxu0 }
 0x33f   :  { %v3231_v60 = vadd.f32 %v2621_v13, %v2209_v55  ;;  %v2623_v14 = vpop.f32.mrb[10].mxu0 }
 0x340   :  { %v2625_v16 = vpop.f32.mrb[11].mxu0  ;;  %v2638_v19 = vmax.f32 %v3230_v61, 0.0  ;;  %v3232_v20 = vadd.f32 %v2623_v14, %v2205_v45 }
 0x341   :  { %v2639_v17 = vmax.f32 %v3231_v60, 0.0  ;;  %v3233_v18 = vadd.f32 %v2625_v16, %v2209_v55 }
 0x342   :  { %v2640_v23 = vmax.f32 %v3232_v20, 0.0 }
 0x343   :  { %v2641_v21 = vmax.f32 %v3233_v18, 0.0  ;;  %2749 = vmatprep.mubr.f32.mxu0 %v2639_v17 }
 0x344   :  { %2750 = vmatmul.mubr.f32.vlgmr.msra.gmra.mrb[16].mxu0 %v2638_v19 }
 0x345   :  { %v2629_v22 = vpop.f32.mrb[12].mxu0  ;;  %2754 = vmatprep.mubr.f32.mxu0 %v2641_v21 }
 0x346   :  { %v3234_v44 = vadd.f32 %v2629_v22, %v2205_v45  ;;  %v2631_v24 = vpop.f32.mrb[13].mxu0 }
 0x347   :  { %v3235_v43 = vadd.f32 %v2631_v24, %v2209_v55  ;;  %v2633_v48 = vpop.f32.mrb[14].mxu0 }
 0x348   :  { %v2635_v25 = vpop.f32.mrb[15].mxu0  ;;  %2755 = vmatmul.mubr.f32.gmra.mrb[18].mxu0 %v2640_v23  ;;  %v2642_v29 = vmax.f32 %v3234_v44, 0.0  ;;  %v3236_v30 = vadd.f32 %v2633_v48, %v2205_v45 }
 0x349   :  { %v2643_v26 = vmax.f32 %v3235_v43, 0.0  ;;  %v3237_v27 = vadd.f32 %v2635_v25, %v2209_v55 }
 0x34a   :  { %v2644_v32 = vmax.f32 %v3236_v30, 0.0 }
 0x34b   :  { %v2645_v31 = vmax.f32 %v3237_v27, 0.0  ;;  %2759 = vmatprep.mubr.f32.mxu1 %v2643_v26 }
 0x34c   :  { %2760 = vmatmul.mubr.f32.vlgmr.msra.gmra.mrb[16].mxu1 %v2642_v29 }
 0x34d   :  { %2764 = vmatprep.mubr.f32.mxu1 %v2645_v31 }
 0x350   :  { %2765 = vmatmul.mubr.f32.gmra.mrb[18].mxu1 %v2644_v32 }
 0x417   :  { %v3146_v35 = vpop.f32.mrb[16].mxu0 }
 0x418   :  { %v3147_v38 = vpop.f32.mrb[17].mxu0 }
 0x419   :  { %v3148_v39 = vadd.f32 %v3147_v38, %v3146_v35 }
 0x41b   :  { %v2752_v42 = vadd.f32 %v3148_v39, %v3113_v37  ;;  %v3149_v40 = vpop.f32.mrb[18].mxu0 }
 0x41c   :  { %v3150_v49 = vpop.f32.mrb[19].mxu0 }
 0x41d   :  { %2770 = vst [vmem:[#allocation10] sm:$0xff] %v2752_v42  ;;  %v3151_v51 = vadd.f32 %v3150_v49, %v3149_v40 }
 0x41f   :  { %v2757_v52 = vadd.f32 %v3151_v51, %v3113_v37  ;;  %v3152_v54 = vpop.f32.mrb[16].mxu1 }
 0x420   :  { %v3153_v57 = vpop.f32.mrb[17].mxu1 }
 0x421   :  { %2771 = vst [vmem:[#allocation10 + $0x8] sm:$0xff] %v2757_v52  ;;  %v3154_v28 = vadd.f32 %v3153_v57, %v3152_v54 }
 0x423   :  { %v2762_v12 = vadd.f32 %v3154_v28, %v3113_v37  ;;  %v3155_v62 = vpop.f32.mrb[18].mxu1 }
 0x424   :  { %v3156_v0 = vpop.f32.mrb[19].mxu1 }
 0x425   :  { %2772 = vst [vmem:[#allocation10 + $0x10] sm:$0xff] %v2762_v12  ;;  %v3157_v1 = vadd.f32 %v3156_v0, %v3155_v62 }
 0x427   :  { %v2767_v50 = vadd.f32 %v3157_v1, %v3113_v37 }
 0x429   :  { %2773 = vst [vmem:[#allocation10 + $0x18] sm:$0xff] %v2767_v50 }
 0x42a   :  { %3876 = shalt.err (!%p3873_p8)
}
 0x42b   :  { %s3877_s12 = scalar_lea.hbm %s4179_s7, 512 }
 0x42c   :  { %p3878_p9 = scmp.ne.s32.totalorder %s4179_s7, %s3877_s12  ;;  %p3881_p10 = scmp.lt.u32.totalorder %s3877_s12, %s4179_s7 }
 0x42e   :  { %p3883_p11 = pnand %p3881_p10, %p3878_p9 }
 0x430   :  { %3886 = shalt.err (!%p3883_p11)
}
 0x431   :  { %2785 = dma.vmem_to_hbm [thread:$0]  %s2780_s9, 512, %s4179_s7, [#allocation4], %s3902_s0, %s3902_s0, %s3903_s15  }
 0x432   :  { %3893 = dma.done.wait [#allocation4], 512  }
 0x433   :  { %3894 = vsyncadd [#allocation4], 4294966784 }
 0x434   :  { %2789 = vsyncpa [#allocation3], 1 }
 0x435   :  { %2790 = vsyncpa [#allocation6], 1 }
 0x436   :  { %2791 = vsyncpa [#allocation9], 1 }
 0x437   :  { %2792 = vsyncpa [#allocation4], 1 }

</bundles_post_ra>
